<compile_context>
chip_gen: v6e
topology: v6e:2x2x1
jax: 0.10.0
libtpu: 0.0.40
codegen_flags: <defaults>
</compile_context>

<pallas_src>
import functools

import jax
import jax.numpy as jnp
from jax.experimental import pallas as pl
from jax.experimental.pallas import tpu as pltpu

LN_EPS = 1e-5                      # PyTorch nn.LayerNorm default eps
_SQRT_2_OVER_PI = 0.7978845608028654


def _layernorm(x, gamma, beta):
    mu = jnp.mean(x, axis=-1, keepdims=True)
    var = jnp.mean(jnp.square(x - mu), axis=-1, keepdims=True)
    return (x - mu) * jax.lax.rsqrt(var + LN_EPS) * gamma + beta


def _gelu_tanh(x):
    # tanh-approx GELU: the transcendental goes to the (otherwise idle) EUP slot.
    # TODO(synk): nn.GELU() default is exact erf; tanh form deviates by <~3e-3.
    return 0.5 * x * (1.0 + jnp.tanh(_SQRT_2_OVER_PI * (x + 0.044715 * x * x * x)))


def _mha(xq, xkv, bb, lq, lk, wq, wkv, wo, bq, bkv, bo, nhead):
    """Multi-head attention; bf16 MXU inputs, f32 accumulation.

    xq:  (bb*lq, D) bf16 query-side rows.
    xkv: (bb*lk, D) bf16 key/value-side rows.
    wq: (D, D) bf16; wkv: (D, 2D) bf16 fused [K|V] (head-major inside each half);
    wo: (D, D) bf16.  Biases f32.  Returns (bb*lq, D) f32.
    """
    d = wq.shape[0]
    dh = d // nhead
    scale = 1.0 / float(dh) ** 0.5

    # Projections: single K=D MXU matmuls with M = bb*L rows.
    q = jnp.dot(xq, wq, preferred_element_type=jnp.float32) + bq        # (bb*lq, D)
    kv = jnp.dot(xkv, wkv, preferred_element_type=jnp.float32) + bkv    # (bb*lk, 2D)

    q = (q * scale).astype(jnp.bfloat16).reshape(bb, lq, d)
    kv = kv.astype(jnp.bfloat16).reshape(bb, lk, 2 * d)

    # Head split: one lane slice + stack per head; heads land on a leading
    # batch axis so scores / AV are single batched einsums over bb*nhead.
    # TODO(synk): replace with one pltpu.einshape relayout per tensor.
    qh = jnp.stack([q[:, :, h * dh:(h + 1) * dh] for h in range(nhead)], axis=0)
    kh = jnp.stack([kv[:, :, h * dh:(h + 1) * dh] for h in range(nhead)], axis=0)
    vh = jnp.stack([kv[:, :, d + h * dh:d + (h + 1) * dh] for h in range(nhead)],
                   axis=0)
    qh = qh.reshape(nhead * bb, lq, dh)
    kh = kh.reshape(nhead * bb, lk, dh)
    vh = vh.reshape(nhead * bb, lk, dh)

    # Scores: one batched MXU contraction (Q @ K^T; contraction on the trailing
    # dim of both operands — the Mosaic-native dimension order).
    s = jnp.einsum('nqd,nkd->nqk', qh, kh,
                   preferred_element_type=jnp.float32)                  # (n,lq,lk)

    # Softmax in f32, exact divide (tiny denominator; keeps reference parity).
    s = s - jnp.max(s, axis=-1, keepdims=True)
    p = jnp.exp(s)
    p = p / jnp.sum(p, axis=-1, keepdims=True)

    o = jnp.einsum('nqk,nkd->nqd', p.astype(jnp.bfloat16), vh,
                   preferred_element_type=jnp.float32)                  # (n,lq,dh)

    # Fold the head-concat into the output projection: merge heads back onto
    # lanes once and do ONE K=D MXU matmul (no per-head small-K matmuls,
    # no cross-head post-sum).
    o = o.astype(jnp.bfloat16).reshape(nhead, bb, lq, dh)
    o = jnp.concatenate([o[h] for h in range(nhead)], axis=-1)          # (bb,lq,D)
    o = o.reshape(bb * lq, d)
    return jnp.dot(o, wo, preferred_element_type=jnp.float32) + bo      # (bb*lq,D)


def qformer_kernel(
        xkv_ref, img_ref,
        s_wq_ref, s_wkv_ref, s_wo_ref, s_bq_ref, s_bkv_ref, s_bo_ref,
        c_wq_ref, c_wkv_ref, c_wo_ref, c_bq_ref, c_bkv_ref, c_bo_ref,
        g1_ref, be1_ref, w1_ref, b1_ref, w2_ref, b2_ref, g2_ref, be2_ref,
        out_ref, *, nhead, lq):
    """Whole QFormer layer for block_b batch elements; intermediates stay in VMEM."""
    bb, lkv, d = xkv_ref.shape
    limg = img_ref.shape[1]

    xkv = xkv_ref[...]                                  # (bb, lq+li, D) bf16
    xq = xkv[:, :lq, :].reshape(bb * lq, d)             # query rows only
    xkv_flat = xkv.reshape(bb * lkv, d)

    # Self-attention: K/V over [query; instruction]; Q only over the query rows
    # (the reference slices x[:, :Lq] right after self-attention and attention
    # output row i depends only on query row i).
    h = _mha(xq, xkv_flat, bb, lq, lkv,
             s_wq_ref[...], s_wkv_ref[...], s_wo_ref[...],
             s_bq_ref[...], s_bkv_ref[...], s_bo_ref[...], nhead)

    # Cross-attention over image embeddings.
    img_flat = img_ref[...].reshape(bb * limg, d)
    h = _mha(h.astype(jnp.bfloat16), img_flat, bb, lq, limg,
             c_wq_ref[...], c_wkv_ref[...], c_wo_ref[...],
             c_bq_ref[...], c_bkv_ref[...], c_bo_ref[...], nhead)

    # FFN: LayerNorm -> Linear(D,4D) -> GELU -> Linear(4D,D) -> LayerNorm.
    y = _layernorm(h, g1_ref[...], be1_ref[...])
    y = jnp.dot(y.astype(jnp.bfloat16), w1_ref[...],
                preferred_element_type=jnp.float32) + b1_ref[...]
    y = _gelu_tanh(y)
    y = jnp.dot(y.astype(jnp.bfloat16), w2_ref[...],
                preferred_element_type=jnp.float32) + b2_ref[...]
    y = _layernorm(y, g2_ref[...], be2_ref[...])

    # Single wide store per grid step (use D % 128 == 0 at deployment sizes for
    # unmasked vst; toy D=32 lowers to masked partial stores).
    out_ref[...] = y.reshape(bb, lq, d).astype(out_ref.dtype)


# ------------------------------- wrapper ---------------------------------- #

def qformer_layer(query_tokens, instruction_embeds, image_embeds, params, nhead,
                  block_b=None):
    B, lq, d = query_tokens.shape
    li = instruction_embeds.shape[1]
    limg = image_embeds.shape[1]
    assert d % nhead == 0

    # Default: a 2-wide parallel grid (one step per v7x TensorCore) with B/2
    # examples packed per step so the MXU M dimension is block_b*Lq rows.
    if block_b is None:
        block_b = B // 2 if (B % 2 == 0 and B > 1) else B
    assert B % block_b == 0
    steps = B // block_b

    # Host-side (free): pre-concatenate the self-attention K/V input so the
    # kernel never materializes an in-kernel sublane concat; bf16 activations
    # halve HBM->VMEM DMA bytes (accumulation stays f32 in-kernel).
    lkv = lq + li
    x_kv = jnp.concatenate([query_tokens, instruction_embeds],
                           axis=1).astype(jnp.bfloat16)
    img = image_embeds.astype(jnp.bfloat16)

    sa = params["self_attn"]
    ca = params["cross_attn"]
    ffn = params["ffn"]
    dff = ffn[2].shape[1]
    out_dtype = query_tokens.dtype

    wspec = lambda shp: pl.BlockSpec(shp, lambda b: (0, 0))
    aspec = lambda L: pl.BlockSpec((block_b, L, d), lambda b: (b, 0, 0))

    # Grid-invariant weight blocks (constant index_map -> fetched once).
    # TODO(synk): at production D, single-buffer these (pipeline_mode=
    # pl.Buffered(1)) to halve weight VMEM — v7x has only 64 MiB/TC.
    def attn_specs():
        return [wspec((d, d)), wspec((d, 2 * d)), wspec((d, d)),
                wspec((1, d)), wspec((1, 2 * d)), wspec((1, d))]
    ffn_specs = [wspec((1, d)), wspec((1, d)),
                 wspec((d, dff)), wspec((1, dff)),
                 wspec((dff, d)), wspec((1, d)),
                 wspec((1, d)), wspec((1, d))]

    # Advisory cost estimate so XLA schedules around the fused call.
    def _attn_flops(lk):
        return 2 * d * (lq * d + lk * 2 * d + lq * d) + 4 * lq * lk * d
    flops = B * (_attn_flops(lkv) + _attn_flops(limg) + 4 * lq * d * dff)
    transcendentals = B * (nhead * lq * (lkv + limg) + lq * dff)
    nbytes = lambda a: int(a.size) * a.dtype.itemsize
    param_bytes = sum(nbytes(p) for grp in (sa, ca, ffn) for p in grp)
    bytes_accessed = (nbytes(x_kv) + nbytes(img) + param_bytes
                      + B * lq * d * jnp.dtype(out_dtype).itemsize)

    # Explicit VMEM budget: v5e's default scoped limit is only 16 MiB, v7x has
    # 64 MiB physical VMEM per TC.  Generous at toy sizes, bounded at scale.
    vmem_limit = int(min(64 * 1024 * 1024,
                         max(16 * 1024 * 1024,
                             4 * (param_bytes + nbytes(x_kv) + nbytes(img)))))

    return pl.pallas_call(
        functools.partial(qformer_kernel, nhead=nhead, lq=lq),
        out_shape=jax.ShapeDtypeStruct((B, lq, d), out_dtype),
        grid=(steps,),
        in_specs=[aspec(lkv), aspec(limg)]
                 + attn_specs() + attn_specs() + ffn_specs,
        out_specs=pl.BlockSpec((block_b, lq, d), lambda b: (b, 0, 0)),
        compiler_params=pltpu.CompilerParams(
            dimension_semantics=("parallel",),
            vmem_limit_bytes=vmem_limit),
        cost_estimate=pl.CostEstimate(flops=int(flops),
                                      transcendentals=int(transcendentals),
                                      bytes_accessed=int(bytes_accessed)),
    )(x_kv, img, *sa, *ca, *ffn)


# ----------------------------- parameter init ------------------------------ #

def init_params(key, d, nhead):
    """Linear weights stored (in, out), bf16 (MXU-native); biases/LN params f32.
       PyTorch mapping: Wq = in_proj_weight[:D].T,
       Wkv = concat([in_proj_weight[D:2D].T, in_proj_weight[2D:3D].T], 1),
       Wo = out_proj.weight.T."""
    del nhead
    ks = jax.random.split(key, 16)
    n = lambda k, shp, s=0.05: jax.random.normal(k, shp, jnp.float32) * s

    def attn(keys):
        kq, kkv, ko, kbq, kbkv, kbo = keys
        return (n(kq, (d, d)).astype(jnp.bfloat16),
                n(kkv, (d, 2 * d)).astype(jnp.bfloat16),
                n(ko, (d, d)).astype(jnp.bfloat16),
                n(kbq, (1, d)), n(kbkv, (1, 2 * d)), n(kbo, (1, d)))

    dff = 4 * d
    ffn = (jnp.ones((1, d), jnp.float32), jnp.zeros((1, d), jnp.float32),    # LN1
           n(ks[12], (d, dff)).astype(jnp.bfloat16), n(ks[13], (1, dff)),    # Linear1
           n(ks[14], (dff, d)).astype(jnp.bfloat16), n(ks[15], (1, d)),      # Linear2
           jnp.ones((1, d), jnp.float32), jnp.zeros((1, d), jnp.float32))    # LN2
    return {"self_attn": attn(ks[0:6]), "cross_attn": attn(ks[6:12]), "ffn": ffn}


# --------------------------- pure-JAX reference ---------------------------- #

def _reference(query_tokens, instruction_embeds, image_embeds, params, nhead):
    f32 = lambda t: tuple(p.astype(jnp.float32) for p in t)

    def mha(xq, xkv, p):
        wq, wkv, wo, bq, bkv, bo = f32(p)
        d = xq.shape[-1]
        dh = d // nhead
        q = xq @ wq + bq
        kv = xkv @ wkv + bkv
        k, v = kv[..., :d], kv[..., d:]

        def heads(t):
            b, l, _ = t.shape
            return t.reshape(b, l, nhead, dh).transpose(0, 2, 1, 3)

        qh, kh, vh = heads(q), heads(k), heads(v)
        s = jnp.einsum('bhqd,bhkd->bhqk', qh, kh) * (1.0 / float(dh) ** 0.5)
        pr = jax.nn.softmax(s, axis=-1)
        o = jnp.einsum('bhqk,bhkd->bhqd', pr, vh)
        b, hN, lqq, _ = o.shape
        o = o.transpose(0, 2, 1, 3).reshape(b, lqq, d)
        return o @ wo + bo

    def ln(x, g, b):
        mu = x.mean(-1, keepdims=True)
        var = ((x - mu) ** 2).mean(-1, keepdims=True)
        return (x - mu) * jax.lax.rsqrt(var + LN_EPS) * g + b

    x = jnp.concatenate([query_tokens, instruction_embeds], axis=1)
    h = mha(x, x, params["self_attn"])[:, :query_tokens.shape[1]]
    h = mha(h, image_embeds, params["cross_attn"])
    g1, be1, w1, b1, w2, b2, g2, be2 = f32(params["ffn"])
    y = ln(h, g1, be1)
    y = y @ w1 + b1
    y = 0.5 * y * (1.0 + jnp.tanh(_SQRT_2_OVER_PI * (y + 0.044715 * y ** 3)))
    y = y @ w2 + b2
    return ln(y, g2, be2)


if __name__ == "__main__":
    D, NHEAD = 32, 4
    B, LQ, LI, LIMG = 4, 8, 8, 16

    key = jax.random.PRNGKey(0)
    k1, k2, k3, k4 = jax.random.split(key, 4)
    query_tokens = jax.random.normal(k1, (B, LQ, D), jnp.float32)
    instruction_embeds = jax.random.normal(k2, (B, LI, D), jnp.float32)
    image_embeds = jax.random.normal(k3, (B, LIMG, D), jnp.float32)
    params = init_params(k4, D, NHEAD)

    out = qformer_layer(query_tokens, instruction_embeds, image_embeds, params, NHEAD)
    jax.block_until_ready(out)
    assert out.shape == (B, LQ, D), out.shape
    assert bool(jnp.all(jnp.isfinite(out)))

    # Loose parity check vs. an f32 JAX reference (kernel feeds the MXU bf16).
    ref = _reference(query_tokens, instruction_embeds, image_embeds, params, NHEAD)
    max_err = float(jnp.max(jnp.abs(out.astype(jnp.float32) - ref)))
    assert max_err < 0.3, f"max |kernel - reference| = {max_err}"

    print("KERNEL_OK")
</pallas_src>

<mosaic_0001>
module attributes {stable_mosaic.version = 11 : i64} {
  func.func @qformer_kernel(%arg0: i32, %arg1: memref<2x16x32xbf16, #tpu.memory_space<vmem>>, %arg2: memref<2x16x32xbf16, #tpu.memory_space<vmem>>, %arg3: memref<32x32xbf16, #tpu.memory_space<vmem>>, %arg4: memref<32x64xbf16, #tpu.memory_space<vmem>>, %arg5: memref<32x32xbf16, #tpu.memory_space<vmem>>, %arg6: memref<1x32xf32, #tpu.memory_space<vmem>>, %arg7: memref<1x64xf32, #tpu.memory_space<vmem>>, %arg8: memref<1x32xf32, #tpu.memory_space<vmem>>, %arg9: memref<32x32xbf16, #tpu.memory_space<vmem>>, %arg10: memref<32x64xbf16, #tpu.memory_space<vmem>>, %arg11: memref<32x32xbf16, #tpu.memory_space<vmem>>, %arg12: memref<1x32xf32, #tpu.memory_space<vmem>>, %arg13: memref<1x64xf32, #tpu.memory_space<vmem>>, %arg14: memref<1x32xf32, #tpu.memory_space<vmem>>, %arg15: memref<1x32xf32, #tpu.memory_space<vmem>>, %arg16: memref<1x32xf32, #tpu.memory_space<vmem>>, %arg17: memref<32x128xbf16, #tpu.memory_space<vmem>>, %arg18: memref<1x128xf32, #tpu.memory_space<vmem>>, %arg19: memref<128x32xbf16, #tpu.memory_space<vmem>>, %arg20: memref<1x32xf32, #tpu.memory_space<vmem>>, %arg21: memref<1x32xf32, #tpu.memory_space<vmem>>, %arg22: memref<1x32xf32, #tpu.memory_space<vmem>>, %arg23: memref<2x8x32xf32, #tpu.memory_space<vmem>>) attributes {dimension_semantics = [#tpu.dimension_semantics<parallel>], iteration_bounds = array<i64: 2>, scalar_prefetch = 0 : i64, scratch_operands = 0 : i64, tpu.core_type = #tpu.core_type<tc>, window_params = [{transform_indices = @transform_0, window_bounds = array<i64: 2, 16, 32>}, {transform_indices = @transform_1, window_bounds = array<i64: 2, 16, 32>}, {pipeline_mode = #tpu.pipeline_mode<synchronous>, transform_indices = @transform_2, window_bounds = array<i64: 32, 32>}, {pipeline_mode = #tpu.pipeline_mode<synchronous>, transform_indices = @transform_3, window_bounds = array<i64: 32, 64>}, {pipeline_mode = #tpu.pipeline_mode<synchronous>, transform_indices = @transform_4, window_bounds = array<i64: 32, 32>}, {pipeline_mode = #tpu.pipeline_mode<synchronous>, transform_indices = @transform_5, window_bounds = array<i64: 1, 32>}, {pipeline_mode = #tpu.pipeline_mode<synchronous>, transform_indices = @transform_6, window_bounds = array<i64: 1, 64>}, {pipeline_mode = #tpu.pipeline_mode<synchronous>, transform_indices = @transform_7, window_bounds = array<i64: 1, 32>}, {pipeline_mode = #tpu.pipeline_mode<synchronous>, transform_indices = @transform_8, window_bounds = array<i64: 32, 32>}, {pipeline_mode = #tpu.pipeline_mode<synchronous>, transform_indices = @transform_9, window_bounds = array<i64: 32, 64>}, {pipeline_mode = #tpu.pipeline_mode<synchronous>, transform_indices = @transform_10, window_bounds = array<i64: 32, 32>}, {pipeline_mode = #tpu.pipeline_mode<synchronous>, transform_indices = @transform_11, window_bounds = array<i64: 1, 32>}, {pipeline_mode = #tpu.pipeline_mode<synchronous>, transform_indices = @transform_12, window_bounds = array<i64: 1, 64>}, {pipeline_mode = #tpu.pipeline_mode<synchronous>, transform_indices = @transform_13, window_bounds = array<i64: 1, 32>}, {pipeline_mode = #tpu.pipeline_mode<synchronous>, transform_indices = @transform_14, window_bounds = array<i64: 1, 32>}, {pipeline_mode = #tpu.pipeline_mode<synchronous>, transform_indices = @transform_15, window_bounds = array<i64: 1, 32>}, {pipeline_mode = #tpu.pipeline_mode<synchronous>, transform_indices = @transform_16, window_bounds = array<i64: 32, 128>}, {pipeline_mode = #tpu.pipeline_mode<synchronous>, transform_indices = @transform_17, window_bounds = array<i64: 1, 128>}, {pipeline_mode = #tpu.pipeline_mode<synchronous>, transform_indices = @transform_18, window_bounds = array<i64: 128, 32>}, {pipeline_mode = #tpu.pipeline_mode<synchronous>, transform_indices = @transform_19, window_bounds = array<i64: 1, 32>}, {pipeline_mode = #tpu.pipeline_mode<synchronous>, transform_indices = @transform_20, window_bounds = array<i64: 1, 32>}, {pipeline_mode = #tpu.pipeline_mode<synchronous>, transform_indices = @transform_21, window_bounds = array<i64: 1, 32>}, {transform_indices = @transform_22, window_bounds = array<i64: 2, 8, 32>}]} {
    %c0 = arith.constant 0 : index
    %c0_0 = arith.constant 0 : index
    %c0_1 = arith.constant 0 : index
    %0 = vector.load %arg1[%c0, %c0_0, %c0_1] : memref<2x16x32xbf16, #tpu.memory_space<vmem>>, vector<2x16x32xbf16>
    %1 = vector.extract_strided_slice %0 {offsets = [0, 0, 0], sizes = [2, 8, 32], strides = [1, 1, 1]} : vector<2x16x32xbf16> to vector<2x8x32xbf16>
    %2 = vector.shape_cast %1 : vector<2x8x32xbf16> to vector<16x32xbf16>
    %3 = vector.shape_cast %0 : vector<2x16x32xbf16> to vector<32x32xbf16>
    %c0_2 = arith.constant 0 : index
    %c0_3 = arith.constant 0 : index
    %4 = vector.load %arg3[%c0_2, %c0_3] : memref<32x32xbf16, #tpu.memory_space<vmem>>, vector<32x32xbf16>
    %c0_4 = arith.constant 0 : index
    %c0_5 = arith.constant 0 : index
    %5 = vector.load %arg4[%c0_4, %c0_5] : memref<32x64xbf16, #tpu.memory_space<vmem>>, vector<32x64xbf16>
    %c0_6 = arith.constant 0 : index
    %c0_7 = arith.constant 0 : index
    %6 = vector.load %arg5[%c0_6, %c0_7] : memref<32x32xbf16, #tpu.memory_space<vmem>>, vector<32x32xbf16>
    %c0_8 = arith.constant 0 : index
    %c0_9 = arith.constant 0 : index
    %7 = vector.load %arg6[%c0_8, %c0_9] : memref<1x32xf32, #tpu.memory_space<vmem>>, vector<1x32xf32>
    %c0_10 = arith.constant 0 : index
    %c0_11 = arith.constant 0 : index
    %8 = vector.load %arg7[%c0_10, %c0_11] : memref<1x64xf32, #tpu.memory_space<vmem>>, vector<1x64xf32>
    %c0_12 = arith.constant 0 : index
    %c0_13 = arith.constant 0 : index
    %9 = vector.load %arg8[%c0_12, %c0_13] : memref<1x32xf32, #tpu.memory_space<vmem>>, vector<1x32xf32>
    %cst = arith.constant dense<0.000000e+00> : vector<16x32xf32>
    %10 = tpu.matmul %2, %4, %cst {dimension_numbers = #tpu.dot_dimension_numbers<[1], [0], [0], [1], [0, 0, 1, 1], [], []>} : vector<16x32xbf16>, vector<32x32xbf16>, vector<16x32xf32> -> vector<16x32xf32>
    %11 = vector.broadcast %7 : vector<1x32xf32> to vector<16x32xf32>
    %12 = arith.addf %10, %11 : vector<16x32xf32>
    %cst_14 = arith.constant dense<0.000000e+00> : vector<32x64xf32>
    %13 = tpu.matmul %3, %5, %cst_14 {dimension_numbers = #tpu.dot_dimension_numbers<[1], [0], [0], [1], [0, 0, 1, 1], [], []>} : vector<32x32xbf16>, vector<32x64xbf16>, vector<32x64xf32> -> vector<32x64xf32>
    %14 = vector.broadcast %8 : vector<1x64xf32> to vector<32x64xf32>
    %15 = arith.addf %13, %14 : vector<32x64xf32>
    %cst_15 = arith.constant 0.353553385 : f32
    %16 = vector.broadcast %cst_15 : f32 to vector<16x32xf32>
    %17 = arith.mulf %12, %16 : vector<16x32xf32>
    %18 = arith.truncf %17 : vector<16x32xf32> to vector<16x32xbf16>
    %19 = vector.shape_cast %18 : vector<16x32xbf16> to vector<2x8x32xbf16>
    %20 = arith.truncf %15 : vector<32x64xf32> to vector<32x64xbf16>
    %21 = vector.shape_cast %20 : vector<32x64xbf16> to vector<2x16x64xbf16>
    %22 = vector.extract_strided_slice %19 {offsets = [0, 0, 0], sizes = [2, 8, 8], strides = [1, 1, 1]} : vector<2x8x32xbf16> to vector<2x8x8xbf16>
    %23 = vector.extract_strided_slice %19 {offsets = [0, 0, 8], sizes = [2, 8, 8], strides = [1, 1, 1]} : vector<2x8x32xbf16> to vector<2x8x8xbf16>
    %24 = vector.extract_strided_slice %19 {offsets = [0, 0, 16], sizes = [2, 8, 8], strides = [1, 1, 1]} : vector<2x8x32xbf16> to vector<2x8x8xbf16>
    %25 = vector.extract_strided_slice %19 {offsets = [0, 0, 24], sizes = [2, 8, 8], strides = [1, 1, 1]} : vector<2x8x32xbf16> to vector<2x8x8xbf16>
    %26 = vector.shape_cast %22 : vector<2x8x8xbf16> to vector<1x2x8x8xbf16>
    %27 = vector.shape_cast %23 : vector<2x8x8xbf16> to vector<1x2x8x8xbf16>
    %28 = vector.shape_cast %24 : vector<2x8x8xbf16> to vector<1x2x8x8xbf16>
    %29 = vector.shape_cast %25 : vector<2x8x8xbf16> to vector<1x2x8x8xbf16>
    %30 = tpu.concatenate %26, %27, %28, %29 in 0 : vector<1x2x8x8xbf16>, vector<1x2x8x8xbf16>, vector<1x2x8x8xbf16>, vector<1x2x8x8xbf16> -> vector<4x2x8x8xbf16>
    %31 = vector.extract_strided_slice %21 {offsets = [0, 0, 0], sizes = [2, 16, 8], strides = [1, 1, 1]} : vector<2x16x64xbf16> to vector<2x16x8xbf16>
    %32 = vector.extract_strided_slice %21 {offsets = [0, 0, 8], sizes = [2, 16, 8], strides = [1, 1, 1]} : vector<2x16x64xbf16> to vector<2x16x8xbf16>
    %33 = vector.extract_strided_slice %21 {offsets = [0, 0, 16], sizes = [2, 16, 8], strides = [1, 1, 1]} : vector<2x16x64xbf16> to vector<2x16x8xbf16>
    %34 = vector.extract_strided_slice %21 {offsets = [0, 0, 24], sizes = [2, 16, 8], strides = [1, 1, 1]} : vector<2x16x64xbf16> to vector<2x16x8xbf16>
    %35 = vector.shape_cast %31 : vector<2x16x8xbf16> to vector<1x2x16x8xbf16>
    %36 = vector.shape_cast %32 : vector<2x16x8xbf16> to vector<1x2x16x8xbf16>
    %37 = vector.shape_cast %33 : vector<2x16x8xbf16> to vector<1x2x16x8xbf16>
    %38 = vector.shape_cast %34 : vector<2x16x8xbf16> to vector<1x2x16x8xbf16>
    %39 = tpu.concatenate %35, %36, %37, %38 in 0 : vector<1x2x16x8xbf16>, vector<1x2x16x8xbf16>, vector<1x2x16x8xbf16>, vector<1x2x16x8xbf16> -> vector<4x2x16x8xbf16>
    %40 = vector.extract_strided_slice %21 {offsets = [0, 0, 32], sizes = [2, 16, 8], strides = [1, 1, 1]} : vector<2x16x64xbf16> to vector<2x16x8xbf16>
    %41 = vector.extract_strided_slice %21 {offsets = [0, 0, 40], sizes = [2, 16, 8], strides = [1, 1, 1]} : vector<2x16x64xbf16> to vector<2x16x8xbf16>
    %42 = vector.extract_strided_slice %21 {offsets = [0, 0, 48], sizes = [2, 16, 8], strides = [1, 1, 1]} : vector<2x16x64xbf16> to vector<2x16x8xbf16>
    %43 = vector.extract_strided_slice %21 {offsets = [0, 0, 56], sizes = [2, 16, 8], strides = [1, 1, 1]} : vector<2x16x64xbf16> to vector<2x16x8xbf16>
    %44 = vector.shape_cast %40 : vector<2x16x8xbf16> to vector<1x2x16x8xbf16>
    %45 = vector.shape_cast %41 : vector<2x16x8xbf16> to vector<1x2x16x8xbf16>
    %46 = vector.shape_cast %42 : vector<2x16x8xbf16> to vector<1x2x16x8xbf16>
    %47 = vector.shape_cast %43 : vector<2x16x8xbf16> to vector<1x2x16x8xbf16>
    %48 = tpu.concatenate %44, %45, %46, %47 in 0 : vector<1x2x16x8xbf16>, vector<1x2x16x8xbf16>, vector<1x2x16x8xbf16>, vector<1x2x16x8xbf16> -> vector<4x2x16x8xbf16>
    %49 = vector.shape_cast %30 : vector<4x2x8x8xbf16> to vector<8x8x8xbf16>
    %50 = vector.shape_cast %39 : vector<4x2x16x8xbf16> to vector<8x16x8xbf16>
    %51 = vector.shape_cast %48 : vector<4x2x16x8xbf16> to vector<8x16x8xbf16>
    "tpu.trace_start"() <{level = 10 : i32, message = "nqd,nkd->nqk"}> : () -> ()
    %cst_16 = arith.constant dense<0.000000e+00> : vector<8x8x16xf32>
    %52 = tpu.matmul %49, %50, %cst_16 {dimension_numbers = #tpu.dot_dimension_numbers<[2], [2], [1], [1], [0, 0, 0, 1, 1, 1], [0], [0]>} : vector<8x8x8xbf16>, vector<8x16x8xbf16>, vector<8x8x16xf32> -> vector<8x8x16xf32>
    "tpu.trace_stop"() : () -> ()
    %cst_17 = arith.constant dense<0xFF800000> : vector<8x8xf32>
    %53 = vector.multi_reduction <maximumf>, %52, %cst_17 [2] : vector<8x8x16xf32> to vector<8x8xf32>
    %54 = vector.shape_cast %53 : vector<8x8xf32> to vector<8x8x1xf32>
    %55 = vector.broadcast %54 : vector<8x8x1xf32> to vector<8x8x16xf32>
    %56 = arith.subf %52, %55 : vector<8x8x16xf32>
    %57 = math.exp %56 : vector<8x8x16xf32>
    %cst_18 = arith.constant dense<0.000000e+00> : vector<8x8xf32>
    %58 = vector.multi_reduction <add>, %57, %cst_18 [2] : vector<8x8x16xf32> to vector<8x8xf32>
    %59 = vector.shape_cast %58 : vector<8x8xf32> to vector<8x8x1xf32>
    %60 = vector.broadcast %59 : vector<8x8x1xf32> to vector<8x8x16xf32>
    %61 = arith.divf %57, %60 : vector<8x8x16xf32>
    %62 = arith.truncf %61 : vector<8x8x16xf32> to vector<8x8x16xbf16>
    "tpu.trace_start"() <{level = 10 : i32, message = "nqk,nkd->nqd"}> : () -> ()
    %cst_19 = arith.constant dense<0.000000e+00> : vector<8x8x8xf32>
    %63 = tpu.matmul %62, %51, %cst_19 {dimension_numbers = #tpu.dot_dimension_numbers<[2], [1], [1], [2], [0, 0, 0, 1, 1, 2], [0], [0]>} : vector<8x8x16xbf16>, vector<8x16x8xbf16>, vector<8x8x8xf32> -> vector<8x8x8xf32>
    "tpu.trace_stop"() : () -> ()
    %64 = arith.truncf %63 : vector<8x8x8xf32> to vector<8x8x8xbf16>
    %65 = vector.shape_cast %64 : vector<8x8x8xbf16> to vector<4x2x8x8xbf16>
    %66 = vector.extract_strided_slice %65 {offsets = [0, 0, 0, 0], sizes = [1, 2, 8, 8], strides = [1, 1, 1, 1]} : vector<4x2x8x8xbf16> to vector<1x2x8x8xbf16>
    %67 = vector.shape_cast %66 : vector<1x2x8x8xbf16> to vector<2x8x8xbf16>
    %68 = vector.extract_strided_slice %65 {offsets = [1, 0, 0, 0], sizes = [1, 2, 8, 8], strides = [1, 1, 1, 1]} : vector<4x2x8x8xbf16> to vector<1x2x8x8xbf16>
    %69 = vector.shape_cast %68 : vector<1x2x8x8xbf16> to vector<2x8x8xbf16>
    %70 = vector.extract_strided_slice %65 {offsets = [2, 0, 0, 0], sizes = [1, 2, 8, 8], strides = [1, 1, 1, 1]} : vector<4x2x8x8xbf16> to vector<1x2x8x8xbf16>
    %71 = vector.shape_cast %70 : vector<1x2x8x8xbf16> to vector<2x8x8xbf16>
    %72 = vector.extract_strided_slice %65 {offsets = [3, 0, 0, 0], sizes = [1, 2, 8, 8], strides = [1, 1, 1, 1]} : vector<4x2x8x8xbf16> to vector<1x2x8x8xbf16>
    %73 = vector.shape_cast %72 : vector<1x2x8x8xbf16> to vector<2x8x8xbf16>
    %74 = tpu.concatenate %67, %69, %71, %73 in 2 : vector<2x8x8xbf16>, vector<2x8x8xbf16>, vector<2x8x8xbf16>, vector<2x8x8xbf16> -> vector<2x8x32xbf16>
    %75 = vector.shape_cast %74 : vector<2x8x32xbf16> to vector<16x32xbf16>
    %cst_20 = arith.constant dense<0.000000e+00> : vector<16x32xf32>
    %76 = tpu.matmul %75, %6, %cst_20 {dimension_numbers = #tpu.dot_dimension_numbers<[1], [0], [0], [1], [0, 0, 1, 1], [], []>} : vector<16x32xbf16>, vector<32x32xbf16>, vector<16x32xf32> -> vector<16x32xf32>
    %77 = vector.broadcast %9 : vector<1x32xf32> to vector<16x32xf32>
    %78 = arith.addf %76, %77 : vector<16x32xf32>
    %c0_21 = arith.constant 0 : index
    %c0_22 = arith.constant 0 : index
    %c0_23 = arith.constant 0 : index
    %79 = vector.load %arg2[%c0_21, %c0_22, %c0_23] : memref<2x16x32xbf16, #tpu.memory_space<vmem>>, vector<2x16x32xbf16>
    %80 = vector.shape_cast %79 : vector<2x16x32xbf16> to vector<32x32xbf16>
    %81 = arith.truncf %78 : vector<16x32xf32> to vector<16x32xbf16>
    %c0_24 = arith.constant 0 : index
    %c0_25 = arith.constant 0 : index
    %82 = vector.load %arg9[%c0_24, %c0_25] : memref<32x32xbf16, #tpu.memory_space<vmem>>, vector<32x32xbf16>
    %c0_26 = arith.constant 0 : index
    %c0_27 = arith.constant 0 : index
    %83 = vector.load %arg10[%c0_26, %c0_27] : memref<32x64xbf16, #tpu.memory_space<vmem>>, vector<32x64xbf16>
    %c0_28 = arith.constant 0 : index
    %c0_29 = arith.constant 0 : index
    %84 = vector.load %arg11[%c0_28, %c0_29] : memref<32x32xbf16, #tpu.memory_space<vmem>>, vector<32x32xbf16>
    %c0_30 = arith.constant 0 : index
    %c0_31 = arith.constant 0 : index
    %85 = vector.load %arg12[%c0_30, %c0_31] : memref<1x32xf32, #tpu.memory_space<vmem>>, vector<1x32xf32>
    %c0_32 = arith.constant 0 : index
    %c0_33 = arith.constant 0 : index
    %86 = vector.load %arg13[%c0_32, %c0_33] : memref<1x64xf32, #tpu.memory_space<vmem>>, vector<1x64xf32>
    %c0_34 = arith.constant 0 : index
    %c0_35 = arith.constant 0 : index
    %87 = vector.load %arg14[%c0_34, %c0_35] : memref<1x32xf32, #tpu.memory_space<vmem>>, vector<1x32xf32>
    %cst_36 = arith.constant dense<0.000000e+00> : vector<16x32xf32>
    %88 = tpu.matmul %81, %82, %cst_36 {dimension_numbers = #tpu.dot_dimension_numbers<[1], [0], [0], [1], [0, 0, 1, 1], [], []>} : vector<16x32xbf16>, vector<32x32xbf16>, vector<16x32xf32> -> vector<16x32xf32>
    %89 = vector.broadcast %85 : vector<1x32xf32> to vector<16x32xf32>
    %90 = arith.addf %88, %89 : vector<16x32xf32>
    %cst_37 = arith.constant dense<0.000000e+00> : vector<32x64xf32>
    %91 = tpu.matmul %80, %83, %cst_37 {dimension_numbers = #tpu.dot_dimension_numbers<[1], [0], [0], [1], [0, 0, 1, 1], [], []>} : vector<32x32xbf16>, vector<32x64xbf16>, vector<32x64xf32> -> vector<32x64xf32>
    %92 = vector.broadcast %86 : vector<1x64xf32> to vector<32x64xf32>
    %93 = arith.addf %91, %92 : vector<32x64xf32>
    %cst_38 = arith.constant 0.353553385 : f32
    %94 = vector.broadcast %cst_38 : f32 to vector<16x32xf32>
    %95 = arith.mulf %90, %94 : vector<16x32xf32>
    %96 = arith.truncf %95 : vector<16x32xf32> to vector<16x32xbf16>
    %97 = vector.shape_cast %96 : vector<16x32xbf16> to vector<2x8x32xbf16>
    %98 = arith.truncf %93 : vector<32x64xf32> to vector<32x64xbf16>
    %99 = vector.shape_cast %98 : vector<32x64xbf16> to vector<2x16x64xbf16>
    %100 = vector.extract_strided_slice %97 {offsets = [0, 0, 0], sizes = [2, 8, 8], strides = [1, 1, 1]} : vector<2x8x32xbf16> to vector<2x8x8xbf16>
    %101 = vector.extract_strided_slice %97 {offsets = [0, 0, 8], sizes = [2, 8, 8], strides = [1, 1, 1]} : vector<2x8x32xbf16> to vector<2x8x8xbf16>
    %102 = vector.extract_strided_slice %97 {offsets = [0, 0, 16], sizes = [2, 8, 8], strides = [1, 1, 1]} : vector<2x8x32xbf16> to vector<2x8x8xbf16>
    %103 = vector.extract_strided_slice %97 {offsets = [0, 0, 24], sizes = [2, 8, 8], strides = [1, 1, 1]} : vector<2x8x32xbf16> to vector<2x8x8xbf16>
    %104 = vector.shape_cast %100 : vector<2x8x8xbf16> to vector<1x2x8x8xbf16>
    %105 = vector.shape_cast %101 : vector<2x8x8xbf16> to vector<1x2x8x8xbf16>
    %106 = vector.shape_cast %102 : vector<2x8x8xbf16> to vector<1x2x8x8xbf16>
    %107 = vector.shape_cast %103 : vector<2x8x8xbf16> to vector<1x2x8x8xbf16>
    %108 = tpu.concatenate %104, %105, %106, %107 in 0 : vector<1x2x8x8xbf16>, vector<1x2x8x8xbf16>, vector<1x2x8x8xbf16>, vector<1x2x8x8xbf16> -> vector<4x2x8x8xbf16>
    %109 = vector.extract_strided_slice %99 {offsets = [0, 0, 0], sizes = [2, 16, 8], strides = [1, 1, 1]} : vector<2x16x64xbf16> to vector<2x16x8xbf16>
    %110 = vector.extract_strided_slice %99 {offsets = [0, 0, 8], sizes = [2, 16, 8], strides = [1, 1, 1]} : vector<2x16x64xbf16> to vector<2x16x8xbf16>
    %111 = vector.extract_strided_slice %99 {offsets = [0, 0, 16], sizes = [2, 16, 8], strides = [1, 1, 1]} : vector<2x16x64xbf16> to vector<2x16x8xbf16>
    %112 = vector.extract_strided_slice %99 {offsets = [0, 0, 24], sizes = [2, 16, 8], strides = [1, 1, 1]} : vector<2x16x64xbf16> to vector<2x16x8xbf16>
    %113 = vector.shape_cast %109 : vector<2x16x8xbf16> to vector<1x2x16x8xbf16>
    %114 = vector.shape_cast %110 : vector<2x16x8xbf16> to vector<1x2x16x8xbf16>
    %115 = vector.shape_cast %111 : vector<2x16x8xbf16> to vector<1x2x16x8xbf16>
    %116 = vector.shape_cast %112 : vector<2x16x8xbf16> to vector<1x2x16x8xbf16>
    %117 = tpu.concatenate %113, %114, %115, %116 in 0 : vector<1x2x16x8xbf16>, vector<1x2x16x8xbf16>, vector<1x2x16x8xbf16>, vector<1x2x16x8xbf16> -> vector<4x2x16x8xbf16>
    %118 = vector.extract_strided_slice %99 {offsets = [0, 0, 32], sizes = [2, 16, 8], strides = [1, 1, 1]} : vector<2x16x64xbf16> to vector<2x16x8xbf16>
    %119 = vector.extract_strided_slice %99 {offsets = [0, 0, 40], sizes = [2, 16, 8], strides = [1, 1, 1]} : vector<2x16x64xbf16> to vector<2x16x8xbf16>
    %120 = vector.extract_strided_slice %99 {offsets = [0, 0, 48], sizes = [2, 16, 8], strides = [1, 1, 1]} : vector<2x16x64xbf16> to vector<2x16x8xbf16>
    %121 = vector.extract_strided_slice %99 {offsets = [0, 0, 56], sizes = [2, 16, 8], strides = [1, 1, 1]} : vector<2x16x64xbf16> to vector<2x16x8xbf16>
    %122 = vector.shape_cast %118 : vector<2x16x8xbf16> to vector<1x2x16x8xbf16>
    %123 = vector.shape_cast %119 : vector<2x16x8xbf16> to vector<1x2x16x8xbf16>
    %124 = vector.shape_cast %120 : vector<2x16x8xbf16> to vector<1x2x16x8xbf16>
    %125 = vector.shape_cast %121 : vector<2x16x8xbf16> to vector<1x2x16x8xbf16>
    %126 = tpu.concatenate %122, %123, %124, %125 in 0 : vector<1x2x16x8xbf16>, vector<1x2x16x8xbf16>, vector<1x2x16x8xbf16>, vector<1x2x16x8xbf16> -> vector<4x2x16x8xbf16>
    %127 = vector.shape_cast %108 : vector<4x2x8x8xbf16> to vector<8x8x8xbf16>
    %128 = vector.shape_cast %117 : vector<4x2x16x8xbf16> to vector<8x16x8xbf16>
    %129 = vector.shape_cast %126 : vector<4x2x16x8xbf16> to vector<8x16x8xbf16>
    "tpu.trace_start"() <{level = 10 : i32, message = "nqd,nkd->nqk"}> : () -> ()
    %cst_39 = arith.constant dense<0.000000e+00> : vector<8x8x16xf32>
    %130 = tpu.matmul %127, %128, %cst_39 {dimension_numbers = #tpu.dot_dimension_numbers<[2], [2], [1], [1], [0, 0, 0, 1, 1, 1], [0], [0]>} : vector<8x8x8xbf16>, vector<8x16x8xbf16>, vector<8x8x16xf32> -> vector<8x8x16xf32>
    "tpu.trace_stop"() : () -> ()
    %cst_40 = arith.constant dense<0xFF800000> : vector<8x8xf32>
    %131 = vector.multi_reduction <maximumf>, %130, %cst_40 [2] : vector<8x8x16xf32> to vector<8x8xf32>
    %132 = vector.shape_cast %131 : vector<8x8xf32> to vector<8x8x1xf32>
    %133 = vector.broadcast %132 : vector<8x8x1xf32> to vector<8x8x16xf32>
    %134 = arith.subf %130, %133 : vector<8x8x16xf32>
    %135 = math.exp %134 : vector<8x8x16xf32>
    %cst_41 = arith.constant dense<0.000000e+00> : vector<8x8xf32>
    %136 = vector.multi_reduction <add>, %135, %cst_41 [2] : vector<8x8x16xf32> to vector<8x8xf32>
    %137 = vector.shape_cast %136 : vector<8x8xf32> to vector<8x8x1xf32>
    %138 = vector.broadcast %137 : vector<8x8x1xf32> to vector<8x8x16xf32>
    %139 = arith.divf %135, %138 : vector<8x8x16xf32>
    %140 = arith.truncf %139 : vector<8x8x16xf32> to vector<8x8x16xbf16>
    "tpu.trace_start"() <{level = 10 : i32, message = "nqk,nkd->nqd"}> : () -> ()
    %cst_42 = arith.constant dense<0.000000e+00> : vector<8x8x8xf32>
    %141 = tpu.matmul %140, %129, %cst_42 {dimension_numbers = #tpu.dot_dimension_numbers<[2], [1], [1], [2], [0, 0, 0, 1, 1, 2], [0], [0]>} : vector<8x8x16xbf16>, vector<8x16x8xbf16>, vector<8x8x8xf32> -> vector<8x8x8xf32>
    "tpu.trace_stop"() : () -> ()
    %142 = arith.truncf %141 : vector<8x8x8xf32> to vector<8x8x8xbf16>
    %143 = vector.shape_cast %142 : vector<8x8x8xbf16> to vector<4x2x8x8xbf16>
    %144 = vector.extract_strided_slice %143 {offsets = [0, 0, 0, 0], sizes = [1, 2, 8, 8], strides = [1, 1, 1, 1]} : vector<4x2x8x8xbf16> to vector<1x2x8x8xbf16>
    %145 = vector.shape_cast %144 : vector<1x2x8x8xbf16> to vector<2x8x8xbf16>
    %146 = vector.extract_strided_slice %143 {offsets = [1, 0, 0, 0], sizes = [1, 2, 8, 8], strides = [1, 1, 1, 1]} : vector<4x2x8x8xbf16> to vector<1x2x8x8xbf16>
    %147 = vector.shape_cast %146 : vector<1x2x8x8xbf16> to vector<2x8x8xbf16>
    %148 = vector.extract_strided_slice %143 {offsets = [2, 0, 0, 0], sizes = [1, 2, 8, 8], strides = [1, 1, 1, 1]} : vector<4x2x8x8xbf16> to vector<1x2x8x8xbf16>
    %149 = vector.shape_cast %148 : vector<1x2x8x8xbf16> to vector<2x8x8xbf16>
    %150 = vector.extract_strided_slice %143 {offsets = [3, 0, 0, 0], sizes = [1, 2, 8, 8], strides = [1, 1, 1, 1]} : vector<4x2x8x8xbf16> to vector<1x2x8x8xbf16>
    %151 = vector.shape_cast %150 : vector<1x2x8x8xbf16> to vector<2x8x8xbf16>
    %152 = tpu.concatenate %145, %147, %149, %151 in 2 : vector<2x8x8xbf16>, vector<2x8x8xbf16>, vector<2x8x8xbf16>, vector<2x8x8xbf16> -> vector<2x8x32xbf16>
    %153 = vector.shape_cast %152 : vector<2x8x32xbf16> to vector<16x32xbf16>
    %cst_43 = arith.constant dense<0.000000e+00> : vector<16x32xf32>
    %154 = tpu.matmul %153, %84, %cst_43 {dimension_numbers = #tpu.dot_dimension_numbers<[1], [0], [0], [1], [0, 0, 1, 1], [], []>} : vector<16x32xbf16>, vector<32x32xbf16>, vector<16x32xf32> -> vector<16x32xf32>
    %155 = vector.broadcast %87 : vector<1x32xf32> to vector<16x32xf32>
    %156 = arith.addf %154, %155 : vector<16x32xf32>
    %c0_44 = arith.constant 0 : index
    %c0_45 = arith.constant 0 : index
    %157 = vector.load %arg15[%c0_44, %c0_45] : memref<1x32xf32, #tpu.memory_space<vmem>>, vector<1x32xf32>
    %c0_46 = arith.constant 0 : index
    %c0_47 = arith.constant 0 : index
    %158 = vector.load %arg16[%c0_46, %c0_47] : memref<1x32xf32, #tpu.memory_space<vmem>>, vector<1x32xf32>
    %cst_48 = arith.constant dense<0.000000e+00> : vector<16xf32>
    %159 = vector.multi_reduction <add>, %156, %cst_48 [1] : vector<16x32xf32> to vector<16xf32>
    %160 = vector.shape_cast %159 : vector<16xf32> to vector<16x1xf32>
    %cst_49 = arith.constant 3.200000e+01 : f32
    %161 = vector.broadcast %cst_49 : f32 to vector<16x1xf32>
    %162 = arith.divf %160, %161 : vector<16x1xf32>
    %163 = vector.broadcast %162 : vector<16x1xf32> to vector<16x32xf32>
    %164 = arith.subf %156, %163 : vector<16x32xf32>
    %165 = arith.mulf %164, %164 : vector<16x32xf32>
    %cst_50 = arith.constant dense<0.000000e+00> : vector<16xf32>
    %166 = vector.multi_reduction <add>, %165, %cst_50 [1] : vector<16x32xf32> to vector<16xf32>
    %167 = vector.shape_cast %166 : vector<16xf32> to vector<16x1xf32>
    %cst_51 = arith.constant 3.200000e+01 : f32
    %168 = vector.broadcast %cst_51 : f32 to vector<16x1xf32>
    %169 = arith.divf %167, %168 : vector<16x1xf32>
    %170 = vector.broadcast %162 : vector<16x1xf32> to vector<16x32xf32>
    %171 = arith.subf %156, %170 : vector<16x32xf32>
    %cst_52 = arith.constant 9.99999974E-6 : f32
    %172 = vector.broadcast %cst_52 : f32 to vector<16x1xf32>
    %173 = arith.addf %169, %172 : vector<16x1xf32>
    %174 = math.rsqrt %173 : vector<16x1xf32>
    %175 = vector.broadcast %174 : vector<16x1xf32> to vector<16x32xf32>
    %176 = arith.mulf %171, %175 : vector<16x32xf32>
    %177 = vector.broadcast %157 : vector<1x32xf32> to vector<16x32xf32>
    %178 = arith.mulf %176, %177 : vector<16x32xf32>
    %179 = vector.broadcast %158 : vector<1x32xf32> to vector<16x32xf32>
    %180 = arith.addf %178, %179 : vector<16x32xf32>
    %181 = arith.truncf %180 : vector<16x32xf32> to vector<16x32xbf16>
    %c0_53 = arith.constant 0 : index
    %c0_54 = arith.constant 0 : index
    %182 = vector.load %arg17[%c0_53, %c0_54] : memref<32x128xbf16, #tpu.memory_space<vmem>>, vector<32x128xbf16>
    %cst_55 = arith.constant dense<0.000000e+00> : vector<16x128xf32>
    %183 = tpu.matmul %181, %182, %cst_55 {dimension_numbers = #tpu.dot_dimension_numbers<[1], [0], [0], [1], [0, 0, 1, 1], [], []>} : vector<16x32xbf16>, vector<32x128xbf16>, vector<16x128xf32> -> vector<16x128xf32>
    %c0_56 = arith.constant 0 : index
    %c0_57 = arith.constant 0 : index
    %184 = vector.load %arg18[%c0_56, %c0_57] : memref<1x128xf32, #tpu.memory_space<vmem>>, vector<1x128xf32>
    %185 = vector.broadcast %184 : vector<1x128xf32> to vector<16x128xf32>
    %186 = arith.addf %183, %185 : vector<16x128xf32>
    %cst_58 = arith.constant 5.000000e-01 : f32
    %187 = vector.broadcast %cst_58 : f32 to vector<16x128xf32>
    %188 = arith.mulf %187, %186 : vector<16x128xf32>
    %cst_59 = arith.constant 4.471500e-02 : f32
    %189 = vector.broadcast %cst_59 : f32 to vector<16x128xf32>
    %190 = arith.mulf %189, %186 : vector<16x128xf32>
    %191 = arith.mulf %190, %186 : vector<16x128xf32>
    %192 = arith.mulf %191, %186 : vector<16x128xf32>
    %193 = arith.addf %186, %192 : vector<16x128xf32>
    %cst_60 = arith.constant 0.797884583 : f32
    %194 = vector.broadcast %cst_60 : f32 to vector<16x128xf32>
    %195 = arith.mulf %194, %193 : vector<16x128xf32>
    %196 = math.tanh %195 : vector<16x128xf32>
    %cst_61 = arith.constant 1.000000e+00 : f32
    %197 = vector.broadcast %cst_61 : f32 to vector<16x128xf32>
    %198 = arith.addf %197, %196 : vector<16x128xf32>
    %199 = arith.mulf %188, %198 : vector<16x128xf32>
    %200 = arith.truncf %199 : vector<16x128xf32> to vector<16x128xbf16>
    %c0_62 = arith.constant 0 : index
    %c0_63 = arith.constant 0 : index
    %201 = vector.load %arg19[%c0_62, %c0_63] : memref<128x32xbf16, #tpu.memory_space<vmem>>, vector<128x32xbf16>
    %cst_64 = arith.constant dense<0.000000e+00> : vector<16x32xf32>
    %202 = tpu.matmul %200, %201, %cst_64 {dimension_numbers = #tpu.dot_dimension_numbers<[1], [0], [0], [1], [0, 0, 1, 1], [], []>} : vector<16x128xbf16>, vector<128x32xbf16>, vector<16x32xf32> -> vector<16x32xf32>
    %c0_65 = arith.constant 0 : index
    %c0_66 = arith.constant 0 : index
    %203 = vector.load %arg20[%c0_65, %c0_66] : memref<1x32xf32, #tpu.memory_space<vmem>>, vector<1x32xf32>
    %204 = vector.broadcast %203 : vector<1x32xf32> to vector<16x32xf32>
    %205 = arith.addf %202, %204 : vector<16x32xf32>
    %c0_67 = arith.constant 0 : index
    %c0_68 = arith.constant 0 : index
    %206 = vector.load %arg21[%c0_67, %c0_68] : memref<1x32xf32, #tpu.memory_space<vmem>>, vector<1x32xf32>
    %c0_69 = arith.constant 0 : index
    %c0_70 = arith.constant 0 : index
    %207 = vector.load %arg22[%c0_69, %c0_70] : memref<1x32xf32, #tpu.memory_space<vmem>>, vector<1x32xf32>
    %cst_71 = arith.constant dense<0.000000e+00> : vector<16xf32>
    %208 = vector.multi_reduction <add>, %205, %cst_71 [1] : vector<16x32xf32> to vector<16xf32>
    %209 = vector.shape_cast %208 : vector<16xf32> to vector<16x1xf32>
    %cst_72 = arith.constant 3.200000e+01 : f32
    %210 = vector.broadcast %cst_72 : f32 to vector<16x1xf32>
    %211 = arith.divf %209, %210 : vector<16x1xf32>
    %212 = vector.broadcast %211 : vector<16x1xf32> to vector<16x32xf32>
    %213 = arith.subf %205, %212 : vector<16x32xf32>
    %214 = arith.mulf %213, %213 : vector<16x32xf32>
    %cst_73 = arith.constant dense<0.000000e+00> : vector<16xf32>
    %215 = vector.multi_reduction <add>, %214, %cst_73 [1] : vector<16x32xf32> to vector<16xf32>
    %216 = vector.shape_cast %215 : vector<16xf32> to vector<16x1xf32>
    %cst_74 = arith.constant 3.200000e+01 : f32
    %217 = vector.broadcast %cst_74 : f32 to vector<16x1xf32>
    %218 = arith.divf %216, %217 : vector<16x1xf32>
    %219 = vector.broadcast %211 : vector<16x1xf32> to vector<16x32xf32>
    %220 = arith.subf %205, %219 : vector<16x32xf32>
    %cst_75 = arith.constant 9.99999974E-6 : f32
    %221 = vector.broadcast %cst_75 : f32 to vector<16x1xf32>
    %222 = arith.addf %218, %221 : vector<16x1xf32>
    %223 = math.rsqrt %222 : vector<16x1xf32>
    %224 = vector.broadcast %223 : vector<16x1xf32> to vector<16x32xf32>
    %225 = arith.mulf %220, %224 : vector<16x32xf32>
    %226 = vector.broadcast %206 : vector<1x32xf32> to vector<16x32xf32>
    %227 = arith.mulf %225, %226 : vector<16x32xf32>
    %228 = vector.broadcast %207 : vector<1x32xf32> to vector<16x32xf32>
    %229 = arith.addf %227, %228 : vector<16x32xf32>
    %230 = vector.shape_cast %229 : vector<16x32xf32> to vector<2x8x32xf32>
    %c0_76 = arith.constant 0 : index
    %c0_77 = arith.constant 0 : index
    %c0_78 = arith.constant 0 : index
    %231 = vector.load %arg23[%c0_76, %c0_77, %c0_78] : memref<2x8x32xf32, #tpu.memory_space<vmem>>, vector<2x8x32xf32>
    tpu.vector_store %arg23[%c0_76, %c0_77, %c0_78], %230 {strides = array<i32>} : memref<2x8x32xf32, #tpu.memory_space<vmem>>, vector<2x8x32xf32>,
    return
  }
  func.func @transform_0(%arg0: i32) -> (i32, i32, i32) {
    %c0_i32 = arith.constant 0 : i32
    %c0_i32_0 = arith.constant 0 : i32
    %c0_i32_1 = arith.constant 0 : i32
    return %arg0, %c0_i32, %c0_i32_0 : i32, i32, i32
  }
  func.func @transform_1(%arg0: i32) -> (i32, i32, i32) {
    %c0_i32 = arith.constant 0 : i32
    %c0_i32_0 = arith.constant 0 : i32
    %c0_i32_1 = arith.constant 0 : i32
    return %arg0, %c0_i32, %c0_i32_0 : i32, i32, i32
  }
  func.func @transform_2(%arg0: i32) -> (i32, i32) {
    %c0_i32 = arith.constant 0 : i32
    %c0_i32_0 = arith.constant 0 : i32
    %c0_i32_1 = arith.constant 0 : i32
    return %c0_i32, %c0_i32_0 : i32, i32
  }
  func.func @transform_3(%arg0: i32) -> (i32, i32) {
    %c0_i32 = arith.constant 0 : i32
    %c0_i32_0 = arith.constant 0 : i32
    %c0_i32_1 = arith.constant 0 : i32
    return %c0_i32, %c0_i32_0 : i32, i32
  }
  func.func @transform_4(%arg0: i32) -> (i32, i32) {
    %c0_i32 = arith.constant 0 : i32
    %c0_i32_0 = arith.constant 0 : i32
    %c0_i32_1 = arith.constant 0 : i32
    return %c0_i32, %c0_i32_0 : i32, i32
  }
  func.func @transform_5(%arg0: i32) -> (i32, i32) {
    %c0_i32 = arith.constant 0 : i32
    %c0_i32_0 = arith.constant 0 : i32
    %c0_i32_1 = arith.constant 0 : i32
    return %c0_i32, %c0_i32_0 : i32, i32
  }
  func.func @transform_6(%arg0: i32) -> (i32, i32) {
    %c0_i32 = arith.constant 0 : i32
    %c0_i32_0 = arith.constant 0 : i32
    %c0_i32_1 = arith.constant 0 : i32
    return %c0_i32, %c0_i32_0 : i32, i32
  }
  func.func @transform_7(%arg0: i32) -> (i32, i32) {
    %c0_i32 = arith.constant 0 : i32
    %c0_i32_0 = arith.constant 0 : i32
    %c0_i32_1 = arith.constant 0 : i32
    return %c0_i32, %c0_i32_0 : i32, i32
  }
  func.func @transform_8(%arg0: i32) -> (i32, i32) {
    %c0_i32 = arith.constant 0 : i32
    %c0_i32_0 = arith.constant 0 : i32
    %c0_i32_1 = arith.constant 0 : i32
    return %c0_i32, %c0_i32_0 : i32, i32
  }
  func.func @transform_9(%arg0: i32) -> (i32, i32) {
    %c0_i32 = arith.constant 0 : i32
    %c0_i32_0 = arith.constant 0 : i32
    %c0_i32_1 = arith.constant 0 : i32
    return %c0_i32, %c0_i32_0 : i32, i32
  }
  func.func @transform_10(%arg0: i32) -> (i32, i32) {
    %c0_i32 = arith.constant 0 : i32
    %c0_i32_0 = arith.constant 0 : i32
    %c0_i32_1 = arith.constant 0 : i32
    return %c0_i32, %c0_i32_0 : i32, i32
  }
  func.func @transform_11(%arg0: i32) -> (i32, i32) {
    %c0_i32 = arith.constant 0 : i32
    %c0_i32_0 = arith.constant 0 : i32
    %c0_i32_1 = arith.constant 0 : i32
    return %c0_i32, %c0_i32_0 : i32, i32
  }
  func.func @transform_12(%arg0: i32) -> (i32, i32) {
    %c0_i32 = arith.constant 0 : i32
    %c0_i32_0 = arith.constant 0 : i32
    %c0_i32_1 = arith.constant 0 : i32
    return %c0_i32, %c0_i32_0 : i32, i32
  }
  func.func @transform_13(%arg0: i32) -> (i32, i32) {
    %c0_i32 = arith.constant 0 : i32
    %c0_i32_0 = arith.constant 0 : i32
    %c0_i32_1 = arith.constant 0 : i32
    return %c0_i32, %c0_i32_0 : i32, i32
  }
  func.func @transform_14(%arg0: i32) -> (i32, i32) {
    %c0_i32 = arith.constant 0 : i32
    %c0_i32_0 = arith.constant 0 : i32
    %c0_i32_1 = arith.constant 0 : i32
    return %c0_i32, %c0_i32_0 : i32, i32
  }
  func.func @transform_15(%arg0: i32) -> (i32, i32) {
    %c0_i32 = arith.constant 0 : i32
    %c0_i32_0 = arith.constant 0 : i32
    %c0_i32_1 = arith.constant 0 : i32
    return %c0_i32, %c0_i32_0 : i32, i32
  }
  func.func @transform_16(%arg0: i32) -> (i32, i32) {
    %c0_i32 = arith.constant 0 : i32
    %c0_i32_0 = arith.constant 0 : i32
    %c0_i32_1 = arith.constant 0 : i32
    return %c0_i32, %c0_i32_0 : i32, i32
  }
  func.func @transform_17(%arg0: i32) -> (i32, i32) {
    %c0_i32 = arith.constant 0 : i32
    %c0_i32_0 = arith.constant 0 : i32
    %c0_i32_1 = arith.constant 0 : i32
    return %c0_i32, %c0_i32_0 : i32, i32
  }
  func.func @transform_18(%arg0: i32) -> (i32, i32) {
    %c0_i32 = arith.constant 0 : i32
    %c0_i32_0 = arith.constant 0 : i32
    %c0_i32_1 = arith.constant 0 : i32
    return %c0_i32, %c0_i32_0 : i32, i32
  }
  func.func @transform_19(%arg0: i32) -> (i32, i32) {
    %c0_i32 = arith.constant 0 : i32
    %c0_i32_0 = arith.constant 0 : i32
    %c0_i32_1 = arith.constant 0 : i32
    return %c0_i32, %c0_i32_0 : i32, i32
  }
  func.func @transform_20(%arg0: i32) -> (i32, i32) {
    %c0_i32 = arith.constant 0 : i32
    %c0_i32_0 = arith.constant 0 : i32
    %c0_i32_1 = arith.constant 0 : i32
    return %c0_i32, %c0_i32_0 : i32, i32
  }
  func.func @transform_21(%arg0: i32) -> (i32, i32) {
    %c0_i32 = arith.constant 0 : i32
    %c0_i32_0 = arith.constant 0 : i32
    %c0_i32_1 = arith.constant 0 : i32
    return %c0_i32, %c0_i32_0 : i32, i32
  }
  func.func @transform_22(%arg0: i32) -> (i32, i32, i32) {
    %c0_i32 = arith.constant 0 : i32
    %c0_i32_0 = arith.constant 0 : i32
    %c0_i32_1 = arith.constant 0 : i32
    return %arg0, %c0_i32, %c0_i32_0 : i32, i32, i32
  }
}

</mosaic_0001>

<bundles_post_ra>
// kernel: tpu_custom_call.1
= control target key start
LH: loop header
LB: loop body
LE: loop exit
PB: predicated region body
PF: predicated region fallthrough
CT: control target
= control target key end

     0   :  { %s5836_s0 = inlined_call_operand.vmem [shape: bf16[4,16,32], index: 0, kind: input, shape index: {}]   ;;  %s5837_s1 = inlined_call_operand.vmem [shape: bf16[4,16,32], index: 1, kind: input, shape index: {}]   ;;  %s5838_s2 = inlined_call_operand.vmem [shape: bf16[32,32], index: 2, kind: input, shape index: {}]   ;;  %s5839_s3 = inlined_call_operand.hbm [shape: bf16[32,64], index: 3, kind: input, shape index: {}]   ;;  %s5840_s4 = inlined_call_operand.hbm [shape: bf16[32,32], index: 4, kind: input, shape index: {}]   ;;  %s5841_s5 = inlined_call_operand.hbm [shape: f32[1,32], index: 5, kind: input, shape index: {}]   ;;  %s5842_s6 = inlined_call_operand.hbm [shape: f32[1,64], index: 6, kind: input, shape index: {}]   ;;  %s5843_s7 = inlined_call_operand.hbm [shape: f32[1,32], index: 7, kind: input, shape index: {}]   ;;  %s5844_s8 = inlined_call_operand.hbm [shape: bf16[32,32], index: 8, kind: input, shape index: {}]   ;;  %s5845_s9 = inlined_call_operand.vmem [shape: bf16[32,64], index: 9, kind: input, shape index: {}]   ;;  %s5846_s10 = inlined_call_operand.hbm [shape: bf16[32,32], index: 10, kind: input, shape index: {}]   ;;  %s5847_s11 = inlined_call_operand.hbm [shape: f32[1,32], index: 11, kind: input, shape index: {}]   ;;  %s5848_s12 = inlined_call_operand.hbm [shape: f32[1,64], index: 12, kind: input, shape index: {}]   ;;  %s5849_s13 = inlined_call_operand.hbm [shape: f32[1,32], index: 13, kind: input, shape index: {}]   ;;  %s5850_s14 = inlined_call_operand.hbm [shape: f32[1,32], index: 14, kind: input, shape index: {}]   ;;  %s5851_s15 = inlined_call_operand.hbm [shape: f32[1,32], index: 15, kind: input, shape index: {}]   ;;  %s5852_s16 = inlined_call_operand.hbm [shape: bf16[32,128], index: 16, kind: input, shape index: {}]   ;;  %s5853_s17 = inlined_call_operand.hbm [shape: f32[1,128], index: 17, kind: input, shape index: {}]   ;;  %s5854_s18 = inlined_call_operand.vmem [shape: bf16[128,32], index: 18, kind: input, shape index: {}]   ;;  %s5855_s19 = inlined_call_operand.vmem [shape: f32[1,32], index: 19, kind: input, shape index: {}]   ;;  %s5856_s20 = inlined_call_operand.vmem [shape: f32[1,32], index: 20, kind: input, shape index: {}]   ;;  %s5857_s21 = inlined_call_operand.vmem [shape: f32[1,32], index: 21, kind: input, shape index: {}]   ;;  %s5858_s22 = inlined_call_operand.hbm [shape: f32[4,8,32], index: 22, kind: output, shape index: {}]  }
   0x1   :  { %5872 = sst [smem:[#allocation42_spill]] %s5836_s0 }
   0x2   :  { %5873 = sst [smem:[#allocation43_spill]] %s5837_s1 }
   0x3   :  { %5874 = sst [smem:[#allocation44_spill]] %s5838_s2 }
   0x4   :  { %5875 = sst [smem:[#allocation45_spill]] %s5839_s3 }
   0x5   :  { %5876 = sst [smem:[#allocation46_spill]] %s5840_s4 }
   0x6   :  { %5877 = sst [smem:[#allocation47_spill]] %s5841_s5 }
   0x7   :  { %5878 = sst [smem:[#allocation48_spill]] %s5842_s6 }
   0x8   :  { %5879 = sst [smem:[#allocation49_spill]] %s5856_s20 }
   0x9   :  { %5880 = sst [smem:[#allocation50_spill]] %s5857_s21 }
   0xa   :  { %5881 = sst [smem:[#allocation51_spill]] %s5858_s22 }
   0xb   :  { %27 = vsyncpa [#allocation3], 0 }
   0xc   :  { %28 = vsyncpa [#allocation6], 0 }
   0xd   :  { %29 = vsyncpa [#allocation9], 0 }
   0xe   :  { %30 = vsyncpa [#allocation12], 0 }
   0xf   :  { %31 = vsyncpa [#allocation15], 0 }
  0x10   :  { %32 = vsyncpa [#allocation18], 0 }
  0x11   :  { %33 = vsyncpa [#allocation21], 0 }
  0x12   :  { %34 = vsyncpa [#allocation24], 0 }
  0x13   :  { %35 = vsyncpa [#allocation4], 0 }
  0x14   :  { %37 = vsyncpa [#allocation4 + $0x1], 0  ;;  %s5094_s3 = smov 0   ;;  %s5096_s28 = smov 0  }
  0x15   :  { %s5098_s29 = smov 0   ;;  %s5100_s30 = smov 0  }
  0x16 LB: > { %5882 = sst [smem:[#allocation35_spill]] %s4938_s3  ;;  %s5115_s4 = sadd.s32 4294967295, %s4950_s30   ;;  %s4950_s30 = sphi %s5100_s30, %s5927_s30   ;;  %s4946_s29 = sphi %s5098_s29, %s5929_s29   ;;  %s4942_s28 = sphi %s5096_s28, %s5931_s28   ;;  %s4938_s3 = sphi %s5094_s3, %s5930_s3  }
  0x17   : > { %5883 = sst [smem:[#allocation36_spill]] %s4946_s29  ;;  %s3698_s0 = sadd.s32 4294967294, %s4950_s30  }
  0x18   : > { %5884 = sst [smem:[#allocation37_spill]] %s4950_s30  ;;  %s5119_s23 = sadd.s32 1, %s4950_s30  }
  0x19   : > { %5885 = sst [smem:[#allocation38_spill]] %s5119_s23  ;;  %s522_s1 = sadd.s32 1, %s4946_s29 }
  0x1a   : > { %s519_s5 = ssub.s32 %s4950_s30, %s5119_s23  ;;  %p532_p0 = scmp.ne.s32.totalorder %s4946_s29, %s4942_s28 }
  0x1b   : > { %p520_p1 = scmp.eq.s32.totalorder %s519_s5, 0  ;;  %p533_p2 = scmp.eq.s32.totalorder %s5115_s4, 1 }
  0x1c   : > { %p538_p3 = scmp.ne.s32.totalorder %s4942_s28, %s4938_s3  ;;  %p539_p4 = scmp.eq.s32.totalorder %s3698_s0, 1 }
  0x1d   : > { %s5130_s24 = scalar_select %p520_p1, %s4946_s29, %s522_s1  }
  0x1e   : > { %p5132_p5 = por %p533_p2, %p532_p0  ;;  %p5136_p6 = por %p539_p4, %p538_p3 }
  0x1f   : > { %5886 = sst [smem:[#allocation39_spill]] %s5130_s24  ;;  %p3699_p7 = scmp.ge.s32.totalorder %s4950_s30, 1 }
  0x20   : > { %s5887_s6 = scalar_select %p5132_p5, 1, 0 }
  0x21   : > { %s5889_s25 = scalar_select %p5136_p6, 1, 0 }
  0x22   : > { %5888 = sst [smem:[#allocation40_spill]] %s5887_s6  ;;  %p546_p8 = scmp.lt.s32.totalorder %s4950_s30, 3 }
  0x23   : > { %5890 = sst [smem:[#allocation41_spill]] %s5889_s25  ;;  %p5869_p9 = scmp.eq.s32.totalorder %s5115_s4, 0 }
  0x24   : > { %p5143_p10 = pnand %p3699_p7, %p546_p8  ;;  %s4952_s2 = smov [#allocation5]  }
  0x25   : > { %s574_s27 = sshll.u32 %s4952_s2, 4  ;;  %s4953_s1 = smov [#allocation8]   ;;  %s575_s27 = int_to_ptr.vmem [resolvable:$true] %s574_s27 }
  0x26   : > { %s5891_s26 = scalar_select %p5143_p10, 1, 0 }
  0x27   : > { %p4257_p11 = pneg %p5143_p10  ;;  %s599_s5 = sshll.u32 %s4953_s1, 4  ;;  %s600_s5 = int_to_ptr.vmem [resolvable:$true] %s599_s5 }
  0x28   : > { %s4954_s24 = smov [#allocation11]   ;;  %s4505_s25 = scalar_lea.vmem %s575_s27, 256 }
  0x29   : > { %p5151_p12 = pnand %p5869_p9, %p4257_p11  ;;  %s620_s29 = sshll.u32 %s4954_s24, 4  ;;  %s621_s29 = int_to_ptr.vmem [resolvable:$true] %s620_s29 }
  0x2a   : > { %p4506_p0 = scmp.ne.s32.totalorder %s575_s27, %s4505_s25  ;;  %p4513_p3 = scmp.lt.s32.totalorder %s575_s27, %s575_s27 }
  0x2b   : > { %p5157_p13 = pneg %p5151_p12  ;;  %p4514_p4 = scmp.lt.s32.totalorder %s4505_s25, %s4505_s25 }
  0x2d   : > { %p4508_p1 = pnand %p4506_p0, %p5157_p13  ;;  %p4515_p7 = por %p4514_p4, %p4513_p3 }
  0x2f   : > { %p4509_p2 = pneg %p4508_p1 }
  0x31   : > { %p4516_p8 = pnand %p4515_p7, %p4509_p2 }
  0x33   : > { %4519 = shalt.err (!%p4516_p8)
}
  0x34   : > { %s4955_s2 = smov 64   ;;  %s4956_s24 = smov 4  }
  0x35   : > { %s5894_s30 = sld [smem:[#allocation46_spill]]  ;;  %s4531_s22 = scalar_lea.vmem %s600_s5, 16 }
  0x36   : > { %p4532_p11 = scmp.ne.s32.totalorder %s600_s5, %s4531_s22  ;;  %s4538_s25 = scalar_lea.vmem %s600_s5, 32 }
  0x37   : > { %p4539_p2 = scmp.lt.s32.totalorder %s600_s5, %s600_s5  ;;  %p4540_p3 = scmp.lt.s32.totalorder %s4538_s25, %s4531_s22 }
  0x38   : > { %p4534_p0 = pnand %p4532_p11, %p5157_p13 }
  0x39   : > { %p4541_p4 = por %p4540_p3, %p4539_p2 }
  0x3a   : > { %p4535_p1 = pneg %p4534_p0 }
  0x3b   : > { %4263 = dma.hbm_to_vmem [thread:$0]  (!%p5151_p12), %s5894_s30, 256, %s575_s27, [#allocation6], %s4955_s2, %s4955_s2, %s4956_s24  }
  0x3c   : > { %p4542_p7 = pnand %p4541_p4, %p4535_p1 }
  0x3e   : > { %4545 = shalt.err (!%p4542_p7)
}
  0x3f   : > { %s5895_s20 = sld [smem:[#allocation48_spill]]  ;;  %s4557_s3 = scalar_lea.vmem %s621_s29, 256 }
  0x40   : > { %p4558_p8 = scmp.ne.s32.totalorder %s621_s29, %s4557_s3  ;;  %p4565_p0 = scmp.lt.s32.totalorder %s621_s29, %s621_s29 }
  0x41   : > { %p4566_p6 = scmp.lt.s32.totalorder %s4557_s3, %s4557_s3 }
  0x42   : > { %p4560_p9 = pnand %p4558_p8, %p5157_p13 }
  0x43   : > { %p4567_p5 = por %p4566_p6, %p4565_p0 }
  0x44   : > { %p4561_p11 = pneg %p4560_p9 }
  0x45   : > { %4269 = dma.hbm_to_vmem [thread:$0]  (!%p5151_p12), %s5895_s20, 16, %s600_s5, [#allocation9]  }
  0x46   : > { %p4568_p10 = pnand %p4567_p5, %p4561_p11 }
  0x48   : > { %4571 = shalt.err (!%p4568_p10)
}
  0x49   : > { %4275 = dma.hbm_to_vmem [thread:$0]  (!%p5151_p12), %s5844_s8, 256, %s621_s29, [#allocation12], %s4955_s2, %s4955_s2, %s4956_s24  }
  0x4a   : > { %s4957_s20 = smov [#allocation14]   ;;  %s4958_s6 = smov [#allocation17]  }
  0x4b   : > { %s650_s30 = sshll.u32 %s4957_s20, 4  ;;  %s672_s27 = sshll.u32 %s4958_s6, 4  ;;  %s651_s30 = int_to_ptr.vmem [resolvable:$true] %s650_s30  ;;  %s673_s27 = int_to_ptr.vmem [resolvable:$true] %s672_s27 }
  0x4c   : > { %s4583_s5 = scalar_lea.vmem %s651_s30, 16  ;;  %s4590_s1 = scalar_lea.vmem %s651_s30, 32 }
  0x4d   : > { %p4584_p9 = scmp.ne.s32.totalorder %s651_s30, %s4583_s5  ;;  %p4591_p10 = scmp.lt.s32.totalorder %s651_s30, %s651_s30 }
  0x4e   : > { %p4592_p1 = scmp.lt.s32.totalorder %s4590_s1, %s4583_s5 }
  0x4f   : > { %p4586_p5 = pnand %p4584_p9, %p5157_p13 }
  0x50   : > { %p4593_p2 = por %p4592_p1, %p4591_p10 }
  0x51   : > { %p4587_p6 = pneg %p4586_p5 }
  0x53   : > { %p4594_p3 = pnand %p4593_p2, %p4587_p6 }
  0x55   : > { %4597 = shalt.err (!%p4594_p3)
}
  0x56   : > { %4281 = dma.hbm_to_vmem [thread:$0]  (!%p5151_p12), %s5847_s11, 16, %s651_s30, [#allocation15]  }
  0x57   : > { %s4609_s3 = scalar_lea.vmem %s673_s27, 16  ;;  %s4616_s22 = scalar_lea.vmem %s673_s27, 32 }
  0x58   : > { %p4610_p4 = scmp.ne.s32.totalorder %s673_s27, %s4609_s3  ;;  %p4617_p11 = scmp.lt.s32.totalorder %s673_s27, %s673_s27 }
  0x59   : > { %p4618_p0 = scmp.lt.s32.totalorder %s4616_s22, %s4609_s3 }
  0x5a   : > { %p4612_p7 = pnand %p4610_p4, %p5157_p13 }
  0x5b   : > { %p4619_p9 = por %p4618_p0, %p4617_p11 }
  0x5c   : > { %p4613_p8 = pneg %p4612_p7 }
  0x5e   : > { %p4620_p5 = pnand %p4619_p9, %p4613_p8 }
  0x60   : > { %4623 = shalt.err (!%p4620_p5)
}
  0x61   : > { %4287 = dma.hbm_to_vmem [thread:$0]  (!%p5151_p12), %s5849_s13, 16, %s673_s27, [#allocation18]  }
  0x62   : > { %s4959_s30 = smov [#allocation20]   ;;  %s4960_s5 = smov [#allocation2]  }
  0x63   : > { %s694_s6 = sshll.u32 %s4959_s30, 4  ;;  %s561_s1 = sshll.u32 %s4960_s5, 4  ;;  %s695_s6 = int_to_ptr.vmem [resolvable:$true] %s694_s6  ;;  %s562_s1 = int_to_ptr.vmem [resolvable:$true] %s561_s1 }
  0x64   : > { %s4635_s25 = scalar_lea.vmem %s695_s6, 16  ;;  %s4642_s29 = scalar_lea.vmem %s695_s6, 32 }
  0x65   : > { %p4636_p6 = scmp.ne.s32.totalorder %s695_s6, %s4635_s25  ;;  %p4643_p2 = scmp.lt.s32.totalorder %s695_s6, %s695_s6 }
  0x66   : > { %p4644_p3 = scmp.lt.s32.totalorder %s4642_s29, %s4635_s25 }
  0x67   : > { %p4638_p10 = pnand %p4636_p6, %p5157_p13 }
  0x68   : > { %p4645_p4 = por %p4644_p3, %p4643_p2 }
  0x69   : > { %p4639_p1 = pneg %p4638_p10 }
  0x6b   : > { %p4646_p7 = pnand %p4645_p4, %p4639_p1 }
  0x6d   : > { %4649 = shalt.err (!%p4646_p7)
}
  0x6e   : > { %4293 = dma.hbm_to_vmem [thread:$0]  (!%p5151_p12), %s5851_s15, 16, %s695_s6, [#allocation21]  }
  0x6f   : > { %s4661_s22 = scalar_lea.vmem %s562_s1, 256  ;;  %p4669_p9 = scmp.lt.s32.totalorder %s562_s1, %s562_s1 }
  0x70   : > { %p4662_p8 = scmp.ne.s32.totalorder %s562_s1, %s4661_s22  ;;  %p4670_p5 = scmp.lt.s32.totalorder %s4661_s22, %s4661_s22 }
  0x72   : > { %p4664_p11 = pnand %p4662_p8, %p5157_p13  ;;  %p4671_p6 = por %p4670_p5, %p4669_p9 }
  0x74   : > { %p4665_p0 = pneg %p4664_p11 }
  0x76   : > { %p4672_p10 = pnand %p4671_p6, %p4665_p0 }
  0x78   : > { %4675 = shalt.err (!%p4672_p10)
}
  0x79   : > { %s5896_s30 = sld [smem:[#allocation45_spill]]  ;;  %s4961_s6 = smov [#allocation7]  }
  0x7a   : > { %s588_s5 = sshll.u32 %s4961_s6, 4  ;;  %s4962_s25 = smov [#allocation10]   ;;  %s589_s5 = int_to_ptr.vmem [resolvable:$true] %s588_s5 }
  0x7b   : > { %s610_s29 = sshll.u32 %s4962_s25, 4  ;;  %s4687_s3 = scalar_lea.vmem %s589_s5, 16  ;;  %s611_s29 = int_to_ptr.vmem [resolvable:$true] %s610_s29 }
  0x7c   : > { %p4688_p1 = scmp.ne.s32.totalorder %s589_s5, %s4687_s3  ;;  %s4694_s27 = scalar_lea.vmem %s589_s5, 32 }
  0x7d   : > { %p4695_p4 = scmp.lt.s32.totalorder %s589_s5, %s589_s5  ;;  %p4696_p7 = scmp.lt.s32.totalorder %s4694_s27, %s4687_s3 }
  0x7e   : > { %p4690_p2 = pnand %p4688_p1, %p5157_p13 }
  0x7f   : > { %4260 = dma.hbm_to_vmem [thread:$0]  (!%p5151_p12), %s5896_s30, 256, %s562_s1, [#allocation3], %s4955_s2, %s4955_s2, %s4956_s24  }
  0x80   : > { %p4691_p3 = pneg %p4690_p2  ;;  %p4697_p8 = por %p4696_p7, %p4695_p4 }
  0x82   : > { %p4698_p11 = pnand %p4697_p8, %p4691_p3 }
  0x84   : > { %4701 = shalt.err (!%p4698_p11)
}
  0x85   : > { %s5897_s21 = sld [smem:[#allocation47_spill]]  ;;  %s4713_s20 = scalar_lea.vmem %s611_s29, 16 }
  0x86   : > { %p4714_p0 = scmp.ne.s32.totalorder %s611_s29, %s4713_s20  ;;  %s4720_s30 = scalar_lea.vmem %s611_s29, 32 }
  0x87   : > { %p4721_p6 = scmp.lt.s32.totalorder %s611_s29, %s611_s29  ;;  %p4722_p10 = scmp.lt.s32.totalorder %s4720_s30, %s4713_s20 }
  0x88   : > { %p4716_p9 = pnand %p4714_p0, %p5157_p13 }
  0x89   : > { %p4723_p1 = por %p4722_p10, %p4721_p6 }
  0x8a   : > { %p4717_p5 = pneg %p4716_p9 }
  0x8b   : > { %4266 = dma.hbm_to_vmem [thread:$0]  (!%p5151_p12), %s5897_s21, 16, %s589_s5, [#allocation6]  }
  0x8c   : > { %p4724_p2 = pnand %p4723_p1, %p4717_p5 }
  0x8e   : > { %4727 = shalt.err (!%p4724_p2)
}
  0x8f   : > { %4272 = dma.hbm_to_vmem [thread:$0]  (!%p5151_p12), %s5843_s7, 16, %s611_s29, [#allocation9]  }
  0x90   : > { %s4963_s5 = smov [#allocation13]   ;;  %s4964_s27 = smov [#allocation16]  }
  0x91   : > { %s636_s3 = sshll.u32 %s4963_s5, 4  ;;  %s661_s22 = sshll.u32 %s4964_s27, 4  ;;  %s637_s3 = int_to_ptr.vmem [resolvable:$true] %s636_s3  ;;  %s662_s22 = int_to_ptr.vmem [resolvable:$true] %s661_s22 }
  0x92   : > { %s4739_s1 = scalar_lea.vmem %s637_s3, 256  ;;  %p4747_p8 = scmp.lt.s32.totalorder %s637_s3, %s637_s3 }
  0x93   : > { %p4740_p3 = scmp.ne.s32.totalorder %s637_s3, %s4739_s1  ;;  %p4748_p11 = scmp.lt.s32.totalorder %s4739_s1, %s4739_s1 }
  0x95   : > { %p4742_p4 = pnand %p4740_p3, %p5157_p13  ;;  %p4749_p0 = por %p4748_p11, %p4747_p8 }
  0x97   : > { %p4743_p7 = pneg %p4742_p4 }
  0x99   : > { %p4750_p9 = pnand %p4749_p0, %p4743_p7 }
  0x9b   : > { %4753 = shalt.err (!%p4750_p9)
}
  0x9c   : > { %4278 = dma.hbm_to_vmem [thread:$0]  (!%p5151_p12), %s5846_s10, 256, %s637_s3, [#allocation12], %s4955_s2, %s4955_s2, %s4956_s24  }
  0x9d   : > { %s4765_s20 = scalar_lea.vmem %s662_s22, 16  ;;  %s4772_s30 = scalar_lea.vmem %s662_s22, 32 }
  0x9e   : > { %p4766_p5 = scmp.ne.s32.totalorder %s662_s22, %s4765_s20  ;;  %p4773_p1 = scmp.lt.s32.totalorder %s662_s22, %s662_s22 }
  0x9f   : > { %p4774_p2 = scmp.lt.s32.totalorder %s4772_s30, %s4765_s20 }
  0xa0   : > { %p4768_p6 = pnand %p4766_p5, %p5157_p13 }
  0xa1   : > { %p4775_p3 = por %p4774_p2, %p4773_p1 }
  0xa2   : > { %p4769_p10 = pneg %p4768_p6 }
  0xa4   : > { %p4776_p4 = pnand %p4775_p3, %p4769_p10 }
  0xa6   : > { %4779 = shalt.err (!%p4776_p4)
}
  0xa7   : > { %4284 = dma.hbm_to_vmem [thread:$0]  (!%p5151_p12), %s5848_s12, 16, %s662_s22, [#allocation15]  }
  0xa8   : > { %s4965_s5 = smov [#allocation19]   ;;  %s4966_s27 = smov [#allocation22]  }
  0xa9   : > { %s683_s3 = sshll.u32 %s4965_s5, 4  ;;  %s704_s1 = sshll.u32 %s4966_s27, 4  ;;  %s684_s3 = int_to_ptr.vmem [resolvable:$true] %s683_s3  ;;  %s705_s1 = int_to_ptr.vmem [resolvable:$true] %s704_s1 }
  0xaa   : > { %s4791_s29 = scalar_lea.vmem %s684_s3, 16  ;;  %s4798_s21 = scalar_lea.vmem %s684_s3, 32 }
  0xab   : > { %p4792_p7 = scmp.ne.s32.totalorder %s684_s3, %s4791_s29  ;;  %p4799_p0 = scmp.lt.s32.totalorder %s684_s3, %s684_s3 }
  0xac   : > { %p4800_p9 = scmp.lt.s32.totalorder %s4798_s21, %s4791_s29 }
  0xad   : > { %p4794_p8 = pnand %p4792_p7, %p5157_p13 }
  0xae   : > { %p4801_p5 = por %p4800_p9, %p4799_p0 }
  0xaf   : > { %p4795_p11 = pneg %p4794_p8 }
  0xb1   : > { %p4802_p6 = pnand %p4801_p5, %p4795_p11 }
  0xb3   : > { %4805 = shalt.err (!%p4802_p6)
}
  0xb4   : > { %4290 = dma.hbm_to_vmem [thread:$0]  (!%p5151_p12), %s5850_s14, 16, %s684_s3, [#allocation18]  }
  0xb5   : > { %s4817_s30 = scalar_lea.vmem %s705_s1, 256  ;;  %p4825_p3 = scmp.lt.s32.totalorder %s705_s1, %s705_s1 }
  0xb6   : > { %p4818_p10 = scmp.ne.s32.totalorder %s705_s1, %s4817_s30  ;;  %p4826_p4 = scmp.lt.s32.totalorder %s4817_s30, %s4817_s30 }
  0xb8   : > { %p4820_p1 = pnand %p4818_p10, %p5157_p13  ;;  %p4827_p7 = por %p4826_p4, %p4825_p3 }
  0xba   : > { %p4821_p2 = pneg %p4820_p1 }
  0xbc   : > { %p4828_p8 = pnand %p4827_p7, %p4821_p2 }
  0xbe   : > { %4831 = shalt.err (!%p4828_p8)
}
  0xbf   : > { %4296 = dma.hbm_to_vmem [thread:$0]  (!%p5151_p12), %s5852_s16, 256, %s705_s1, [#allocation21], %s4955_s2, %s4955_s2, %s4956_s24  }
  0xc0   : > { %s4967_s5 = smov [#allocation23]  }
  0xc1   : > { %s718_s3 = sshll.u32 %s4967_s5, 4  ;;  %s719_s3 = int_to_ptr.vmem [resolvable:$true] %s718_s3 }
  0xc2   : > { %s4843_s27 = scalar_lea.vmem %s719_s3, 16  ;;  %s4850_s29 = scalar_lea.vmem %s719_s3, 32 }
  0xc3   : > { %p4844_p11 = scmp.ne.s32.totalorder %s719_s3, %s4843_s27  ;;  %p4851_p5 = scmp.lt.s32.totalorder %s719_s3, %s719_s3 }
  0xc4   : > { %p4852_p6 = scmp.lt.s32.totalorder %s4850_s29, %s4843_s27 }
  0xc5   : > { %p4846_p0 = pnand %p4844_p11, %p5157_p13 }
  0xc6   : > { %p4853_p10 = por %p4852_p6, %p4851_p5 }
  0xc7   : > { %p4847_p9 = pneg %p4846_p0 }
  0xc9   : > { %p4854_p1 = pnand %p4853_p10, %p4847_p9 }
  0xcb   : > { %4857 = shalt.err (!%p4854_p1)
}
  0xcc   : > { %4299 = dma.hbm_to_vmem [thread:$0]  (!%p5151_p12), %s5853_s17, 16, %s719_s3, [#allocation24]  }
  0xcd   : > { %p5898_p2 = scmp.ne.s32.totalorder %s5891_s26, 0 }
  0xce   : > { %p5899_p3 = scmp.eq.s32.totalorder (!%p5898_p2), %s5115_s4, 0 }
  0xcf   : > { %763 = sbr.rel (%p5898_p2) target bundleno = 4128 (0x1020), region = 108 }
  0xd4   : > { %4901 = dma.done.wait (%p5899_p3), [#allocation3], 256   ;;  %p5900_p13 = pmov %p5899_p3 }
  0xd5   : > { %p5901_p4 = pmov %p5899_p3 }
  0xd6   : > { %4903 = vsyncadd (%p5900_p13), [#allocation3], 4294967040 }
  0xd7   : > { %4905 = dma.done.wait (%p5901_p4), [#allocation6], 272   ;;  %p5902_p7 = pmov %p5899_p3 }
  0xd8   : > { %p5903_p8 = pmov %p5899_p3 }
  0xd9   : > { %4907 = vsyncadd (%p5902_p7), [#allocation6], 4294967024 }
  0xda   : > { %4909 = dma.done.wait (%p5903_p8), [#allocation9], 32   ;;  %p5904_p12 = pmov %p5899_p3 }
  0xdb   : > { %p5905_p11 = pmov %p5899_p3 }
  0xdc   : > { %4911 = vsyncadd (%p5904_p12), [#allocation9], 4294967264 }
  0xdd   : > { %4913 = dma.done.wait (%p5905_p11), [#allocation12], 512   ;;  %p5906_p0 = pmov %p5899_p3 }
  0xdf   : > { %4915 = vsyncadd (%p5906_p0), [#allocation12], 4294966784  ;;  %p5907_p9 = pmov %p5906_p0 }
  0xe0   : > { %p5908_p5 = pmov %p5906_p0 }
  0xe1   : > { %4917 = dma.done.wait (%p5907_p9), [#allocation15], 32  }
  0xe2   : > { %4919 = vsyncadd (%p5908_p5), [#allocation15], 4294967264  ;;  %p5909_p6 = pmov %p5906_p0 }
  0xe3   : > { %p5910_p10 = pmov %p5906_p0 }
  0xe4   : > { %4921 = dma.done.wait (%p5909_p6), [#allocation18], 32  }
  0xe5   : > { %4923 = vsyncadd (%p5910_p10), [#allocation18], 4294967264  ;;  %p5911_p1 = pmov %p5906_p0 }
  0xe6   : > { %p5912_p2 = pmov %p5906_p0 }
  0xe7   : > { %4925 = dma.done.wait (%p5911_p1), [#allocation21], 272  }
  0xe8   : > { %4927 = vsyncadd (%p5912_p2), [#allocation21], 4294967024  ;;  %p5913_p3 = pmov %p5906_p0 }
  0xe9   : > { %p5914_p13 = pmov %p5906_p0 }
  0xea   : > { %4929 = dma.done.wait (%p5913_p3), [#allocation24], 16  }
  0xeb   : > { %4931 = vsyncadd (%p5914_p13), [#allocation24], 4294967280  ;;  %s3731_s23 = sshll.u32 %s5115_s4, 1  ;;  %v4968_v0 = vmov 0.0   ;;  %vm4969_vm0 = vmmov 0   ;;  %s5915_s24 = sld [smem:[#allocation42_spill]] }
  0xec   : > { %3931 = vmatprep.subr.bf16.mxu0 %v4968_v0  ;;  %3935 = vmatprep.mubr.msk.bf16.mxu0 %vm4969_vm0, %v4968_v0  ;;  %p885_p4 = scmp.lt.s32.totalorder %s3731_s23, 3  ;;  %s5916_s6 = sld [smem:[#allocation44_spill]]  ;;  %v4395_v5 = vld [vmem:[#allocation2 + $0x8] sm:$0xff]   ;;  %vm942_vm1 = vcmask 261120   ;;  %v4396_v7 = vld [vmem:[#allocation2] sm:$0xff]   ;;  %vm1102_vm2 = vcmask 64512  }
  0xed   : > { %3953 = vmatprep.subr.bf16.mxu1 %v4968_v0  ;;  %3955 = vmatprep.mubr.msk.bf16.mxu1 %vm4969_vm0, %v4968_v0  ;;  %v3737_v12 = vld [vmem:[#allocation7] ss:$0 sm:$0xff]  ;;  %s4970_s3 = smov 120   ;;  %v3742_v24 = vld [vmem:[#allocation8] ss:$0 sm:$0xff]  ;;  %s4971_s27 = smov 112  }
  0xee   : > { %s5933_s23 = smov (!%p885_p4, %s3731_s23), 3  ;;  %s4972_s29 = smov 104   ;;  %vm1471_vm3 = vcmask 130048   ;;  %vm1972_vm4 = vcmask 195584  }
  0xef   : > { %s3828_s26 = sshll.u32 %s5933_s23, 3  ;;  %s4973_s21 = smov 96  }
  0xf0   : > { %s4974_s20 = smov 8   ;;  %s4975_s0 = smov 16  }
  0xf1   : > { %s889_s1 = scalar_lea.vmem %s5915_s24, %s3828_s26  ;;  %s5917_s30 = sld [smem:[#allocation43_spill]] }
  0xf2   : > { %v4391_v1 = vld [vmem:[%s5916_s6 + $0x8] sm:$0xff]   ;;  %v4392_v2 = vld [vmem:[%s5916_s6] sm:$0xff]   ;;  %s4976_s5 = smov 24   ;;  %s5920_s23 = sld [smem:[#allocation40_spill]] }
  0xf3   : > { %3932 = vmatpush3.bf16.msra.mxu0 %v4391_v1  ;;  %v900_v3 = vld [vmem:[%s889_s1] sm:$0xf]  ;;  %v902_v4 = vld [vmem:[%s889_s1 + $0x8] sm:$0xf]  ;;  %v901_v8 = vld [vmem:[%s889_s1 + $0x4] sm:$0xf] }
  0xf4   : > { %3933 = vmatprep.subr.bf16.mxu0 %v4968_v0  ;;  %v3738_v6 = vcombine.low %v900_v3, %v902_v4  ;;  %v3743_v9 = vcombine.low %v900_v3, %v901_v8  ;;  %v903_v10 = vld [vmem:[%s889_s1 + $0xc] sm:$0xf]  ;;  %s5918_s1 = sld [smem:[#allocation49_spill]] }
  0xf5   : > { %v3744_v11 = vcombine.low %v902_v4, %v903_v10  ;;  %s5921_s2 = sld [smem:[#allocation51_spill]] }
  0xf7   : > { %3934 = vmatpush3.bf16.msra.mxu0 %v4392_v2  ;;  %s5522_s25 = scalar_lea.vmem %s5917_s30, %s3828_s26  ;;  %s3834_s26 = sshll.u32 %s5115_s4, 8 }
  0xf8   : > { %3939 = vmatprep.subr.bf16.mxu0 %v4395_v5  ;;  %p5922_p8 = scmp.ne.s32.totalorder %s5920_s23, 0 }
  0xfa   : > { %3936 = vmatmul.mubr.msk.bf16.vlgmr.msra.gmra.mxu0 %vm942_vm1, %v3738_v6 }
  0xfb   : > { %3940 = vmatpush3.bf16.msra.mxu0 %v4395_v5  ;;  %3943 = vmatprep.mubr.msk.bf16.mxu0 %vm942_vm1, %v3743_v9  ;;  %s5790_s24 = scalar_lea.hbm %s5921_s2, %s3834_s26 }
  0xfc   : > { %3941 = vmatprep.subr.bf16.mxu0 %v4396_v7 }
  0xff   : > { %3942 = vmatpush3.bf16.msra.mxu0 %v4396_v7 }
 0x100   : > { %3947 = vmatprep.subr.bf16.mxu0 %v4968_v0 }
 0x102   : > { %3944 = vmatmul.mubr.msk.bf16.vlgmr.msra.gmra.mxu0 %vm942_vm1, %v3744_v11 }
 0x103   : > { %3949 = vmatprep.mubr.msk.bf16.mxu0 %vm4969_vm0, %v4968_v0 }
 0x1ba   : > { %v980_v13 = vpop.f32.mrf.mxu0 }
 0x1bb   : > { %v981_v14 = vadd.f32 %v3737_v12, %v980_v13 }
 0x1bc   : > { %v3937_v15 = vpop.f32.mrf.mxu0 }
 0x1bd   : > { %v1066_v16 = vmul.f32 0.35355338, %v981_v14 }
 0x1be   : > { %v983_v17 = vpop.f32.mrf.mxu0 }
 0x1bf   : > { %v3830_v18 = vpack.c.bf16 %v1066_v16, %v1066_v16  ;;  %v984_v19 = vadd.f32 %v3737_v12, %v983_v17 }
 0x1c0   : > { %v3938_v20 = vpop.f32.mrf.mxu0 }
 0x1c1   : > { %v1067_v21 = vmul.f32 0.35355338, %v984_v19  ;;  %1076 = vrot.lane.b32.xlu1 %v3830_v18, %s4970_s3 }
 0x1c2   : > { %v3945_v22 = vpop.f32.mrf.mxu0 }
 0x1c3   : > { %v3831_v23 = vpack.c.bf16 %v1067_v21, %v1067_v21  ;;  %v1060_v27 = vadd.f32 %v3945_v22, %v3742_v24 }
 0x1c4   : > { %v1051_v25 = vpop.f32.mrf.mxu0 }
 0x1c5   : > { %1078 = vrot.lane.b32.xlu1 %v3831_v23, %s4970_s3  ;;  %v1052_v30 = vadd.f32 %v3742_v24, %v1051_v25 }
 0x1c6   : > { %v3946_v26 = vpop.f32.mrf.mxu0 }
 0x1c7   : > { %v1063_v28 = vadd.f32 %v3946_v26, %v3742_v24 }
 0x1c8   : > { %v1054_v29 = vpop.f32.mrf.mxu0 }
 0x1c9   : > { %v5338_v31 = vpack.c.bf16 %v1063_v28, %v1060_v27  ;;  %v1055_v32 = vadd.f32 %v3742_v24, %v1054_v29 }
 0x1cb   : > { %v1074_v33 = vpack.c.bf16 %v1055_v32, %v1052_v30  ;;  %1096 = vrot.lane.b32.xlu1 %v5338_v31, %s4971_s27  ;;  %v1153_v34 = vsel %vm1102_vm2, %v5338_v31, 0 }
 0x1cc   : > { %3954 = vmatpush3.bf16.xpose.msra.mxu1 %v1153_v34 }
 0x1cd   : > { %1090 = vrot.lane.b32.xlu0 %v1074_v33, %s4970_s3  ;;  %v1107_v35 = vsel %vm1102_vm2, %v1074_v33, 0  ;;  %3965 = vmatprep.subr.bf16.mxu1 %v4968_v0 }
 0x1ce   : > { %3948 = vmatpush3.bf16.xpose.msra.mxu0 %v1107_v35 }
 0x1cf   : > { %1082 = vrot.lane.b32.xlu1 %v3831_v23, %s4971_s27  ;;  %3959 = vmatprep.subr.bf16.mxu0 %v4968_v0 }
 0x1d1   : > { %1092 = vrot.lane.b32.xlu0 %v5338_v31, %s4970_s3 }
 0x1d3   : > { %1100 = vrot.lane.b32.xlu1 %v5338_v31, %s4972_s29  ;;  %3956 = vmatmul.mubr.msk.bf16.vlgmr.msra.gmra.mxu1 %vm1102_vm2, %v3831_v23 }
 0x1d4   : > { %3967 = vmatprep.mubr.msk.bf16.mxu1 %vm4969_vm0, %v4968_v0 }
 0x1d5   : > { %1094 = vrot.lane.b32.xlu0 %v1074_v33, %s4971_s27  ;;  %3950 = vmatmul.mubr.msk.bf16.vlgmr.msra.gmra.mxu0 %vm1102_vm2, %v3830_v18 }
 0x1d6   : > { %3961 = vmatprep.mubr.msk.bf16.mxu0 %vm4969_vm0, %v4968_v0 }
 0x1d7   : > { %1086 = vrot.lane.b32.xlu1 %v3831_v23, %s4972_s29 }
 0x1d9   : > { %1080 = vrot.lane.b32.xlu0 %v3830_v18, %s4971_s27 }
 0x1db   : > { %1568 = vrot.lane.b32.xlu1 %v1074_v33, %s4973_s21 }
 0x1dd   : > { %1098 = vrot.lane.b32.xlu0 %v1074_v33, %s4972_s29 }
 0x1e1   : > { %1084 = vrot.lane.b32.xlu0 %v3830_v18, %s4972_s29 }
 0x233   : > { %v1077_v36 = vpop.permute.xlu1 %1076 }
 0x237   : > { %v1079_v37 = vpop.permute.xlu1 %1078 }
 0x23d   : > { %v5367_v39 = vpop.permute.xlu1 %1096 }
 0x23e   : > { %v1337_v47 = vsel %vm1102_vm2, %v5367_v39, 0 }
 0x23f   : > { %v5365_v38 = vpop.permute.xlu0 %1090 }
 0x240   : > { %v1199_v40 = vsel %vm1102_vm2, %v5365_v38, 0 }
 0x241   : > { %3960 = vmatpush3.bf16.xpose.msra.mxu0 %v1199_v40  ;;  %v1083_v43 = vpop.permute.xlu1 %1082 }
 0x242   : > { %3971 = vmatprep.subr.bf16.mxu0 %v4968_v0 }
 0x243   : > { %v5372_v41 = vpop.permute.xlu0 %1092 }
 0x244   : > { %v1245_v42 = vsel %vm1102_vm2, %v5372_v41, 0 }
 0x245   : > { %3966 = vmatpush3.bf16.xpose.msra.mxu1 %v1245_v42  ;;  %v5387_v48 = vpop.permute.xlu1 %1100 }
 0x246   : > { %3977 = vmatprep.subr.bf16.mxu1 %v4968_v0  ;;  %v1429_v52 = vsel %vm1102_vm2, %v5387_v48, 0 }
 0x247   : > { %v5377_v44 = vpop.permute.xlu0 %1094 }
 0x248   : > { %v1291_v45 = vsel %vm1102_vm2, %v5377_v44, 0  ;;  %3962 = vmatmul.mubr.msk.bf16.vlgmr.msra.gmra.mxu0 %vm1102_vm2, %v1077_v36 }
 0x249   : > { %3972 = vmatpush3.bf16.xpose.msra.mxu0 %v1291_v45  ;;  %3973 = vmatprep.mubr.msk.bf16.mxu0 %vm4969_vm0, %v4968_v0  ;;  %v1087_v51 = vpop.permute.xlu1 %1086 }
 0x24a   : > { %3983 = vmatprep.subr.bf16.mxu0 %v4968_v0 }
 0x24b   : > { %v1081_v46 = vpop.permute.xlu0 %1080 }
 0x24c   : > { %3968 = vmatmul.mubr.msk.bf16.vlgmr.msra.gmra.mxu1 %vm1102_vm2, %v1079_v37 }
 0x24d   : > { %3978 = vmatpush3.bf16.xpose.msra.mxu1 %v1337_v47  ;;  %3979 = vmatprep.mubr.msk.bf16.mxu1 %vm4969_vm0, %v4968_v0  ;;  %v1569_v54 = vpop.permute.xlu1 %1568 }
 0x24e   : > { %3989 = vmatprep.subr.bf16.mxu1 %v4968_v0 }
 0x24f   : > { %v5393_v49 = vpop.permute.xlu0 %1098 }
 0x250   : > { %v1383_v50 = vsel %vm1102_vm2, %v5393_v49, 0  ;;  %3974 = vmatmul.mubr.msk.bf16.vlgmr.msra.gmra.mxu0 %vm1102_vm2, %v1081_v46 }
 0x251   : > { %3984 = vmatpush3.bf16.xpose.msra.mxu0 %v1383_v50  ;;  %3985 = vmatprep.mubr.msk.bf16.mxu0 %vm4969_vm0, %v4968_v0 }
 0x252   : > { %3995 = vmatprep.subr.bf16.mxu0 %v4968_v0 }
 0x253   : > { %v1085_v53 = vpop.permute.xlu0 %1084 }
 0x254   : > { %3980 = vmatmul.mubr.msk.bf16.vlgmr.msra.gmra.mxu1 %vm1102_vm2, %v1083_v43 }
 0x255   : > { %3990 = vmatpush3.bf16.xpose.msra.mxu1 %v1429_v52  ;;  %3991 = vmatprep.mubr.msk.bf16.mxu1 %vm4969_vm0, %v4968_v0 }
 0x256   : > { %4001 = vmatprep.subr.bf16.mxu1 %v4968_v0 }
 0x258   : > { %3986 = vmatmul.mubr.msk.bf16.vlgmr.msra.gmra.mxu0 %vm1102_vm2, %v1085_v53 }
 0x259   : > { %3996 = vmatpush3.bf16.msra.mxu0 %v1569_v54  ;;  %3997 = vmatprep.mubr.msk.bf16.mxu0 %vm4969_vm0, %v4968_v0 }
 0x25a   : > { %4007 = vmatprep.subr.bf16.mxu0 %v4968_v0 }
 0x25c   : > { %3992 = vmatmul.mubr.msk.bf16.vlgmr.msra.gmra.mxu1 %vm1102_vm2, %v1087_v51 }
 0x25d   : > { %4003 = vmatprep.mubr.msk.bf16.mxu1 %vm4969_vm0, %v4968_v0 }
 0x293   : > { %v1189_v55 = vpop.f32.mrf.mxu1 }
 0x294   : > { %v1475_v56 = vsel %vm1471_vm3, %v1189_v55, -inf }
 0x295   : > { %v3957_v57 = vpop.f32.mrf.mxu1  ;;  %1476 = vmax.xlane.f32.xlu1 %v1475_v56  ;;  %v1143_v58 = vpop.f32.mrf.mxu0 }
 0x296   : > { %v1472_v59 = vsel %vm1471_vm3, %v1143_v58, -inf }
 0x297   : > { %v1192_v60 = vpop.f32.mrf.mxu1  ;;  %1473 = vmax.xlane.f32.xlu0 %v1472_v59  ;;  %v3951_v61 = vpop.f32.mrf.mxu0 }
 0x299   : > { %v1146_v62 = vpop.f32.mrf.mxu0  ;;  %v3958_v63 = vpop.f32.mrf.mxu1 }
 0x29b   : > { %v3952_v1 = vpop.f32.mrf.mxu0 }
 0x308   : > { %v1235_v2 = vpop.f32.mrf.mxu0 }
 0x309   : > { %v1478_v11 = vsel %vm1471_vm3, %v1235_v2, -inf }
 0x30a   : > { %v3963_v3 = vpop.f32.mrf.mxu0 }
 0x30c   : > { %v1238_v4 = vpop.f32.mrf.mxu0  ;;  %v1281_v5 = vpop.f32.mrf.mxu1 }
 0x30d   : > { %v1481_v6 = vsel %vm1471_vm3, %v1281_v5, -inf }
 0x30e   : > { %v3969_v7 = vpop.f32.mrf.mxu1  ;;  %1482 = vmax.xlane.f32.xlu0 %v1481_v6  ;;  %v3964_v8 = vpop.f32.mrf.mxu0 }
 0x310   : > { %v1284_v9 = vpop.f32.mrf.mxu1  ;;  %v1327_v10 = vpop.f32.mrf.mxu0 }
 0x311   : > { %v1484_v12 = vsel %vm1471_vm3, %v1327_v10, -inf }
 0x312   : > { %v3970_v13 = vpop.f32.mrf.mxu1  ;;  %1479 = vmax.xlane.f32.xlu0 %v1478_v11  ;;  %1485 = vmax.xlane.f32.xlu1 %v1484_v12  ;;  %v3975_v14 = vpop.f32.mrf.mxu0 }
 0x314   : > { %v1330_v15 = vpop.f32.mrf.mxu0  ;;  %v5419_v16 = vpop.f32.mrf.mxu1 }
 0x315   : > { %v1487_v17 = vsel %vm1471_vm3, %v5419_v16, -inf }
 0x316   : > { %v3981_v18 = vpop.f32.mrf.mxu1  ;;  %1488 = vmax.xlane.f32.xlu0 %v1487_v17  ;;  %v3976_v19 = vpop.f32.mrf.mxu0 }
 0x318   : > { %v1376_v20 = vpop.f32.mrf.mxu1  ;;  %v5423_v21 = vpop.f32.mrf.mxu0 }
 0x319   : > { %v1490_v35 = vsel %vm1471_vm3, %v5423_v21, -inf }
 0x31a   : > { %v3982_v22 = vpop.f32.mrf.mxu1  ;;  %v3987_v23 = vpop.f32.mrf.mxu0 }
 0x31c   : > { %v1422_v24 = vpop.f32.mrf.mxu0  ;;  %v1465_v25 = vpop.f32.mrf.mxu1 }
 0x31d   : > { %v1493_v26 = vsel %vm1471_vm3, %v1465_v25, -inf }
 0x31e   : > { %v3993_v27 = vpop.f32.mrf.mxu1  ;;  %1494 = vmax.xlane.f32.xlu0 %v1493_v26  ;;  %v3988_v28 = vpop.f32.mrf.mxu0 }
 0x31f   : > { %v1477_v32 = vpop.xlane.xlu1 %1476 }
 0x320   : > { %v1468_v29 = vpop.f32.mrf.mxu1  ;;  %v1497_v33 = vsub.f32 %v1189_v55, %v1477_v32  ;;  %v1474_v40 = vpop.xlane.xlu0 %1473 }
 0x322   : > { %v3994_v30 = vpop.f32.mrf.mxu1  ;;  %v1506_v34 = vmul.f32 1.442695, %v1497_v33 }
 0x323   : > { %1660 = vrot.lane.b32.xlu1 %v5365_v38, %s4973_s21  ;;  %v1496_v38 = vsub.f32 %v1143_v58, %v1474_v40 }
 0x324   : > { %4418 = vpow2.f32 %v1506_v34 }
 0x325   : > { %v1504_v42 = vmul.f32 1.442695, %v1496_v38 }
 0x327   : > { %4420 = vpow2.f32 %v1504_v42 }
 0x331   : > { %v4419_v36 = vpop.eup %4418 }
 0x332   : > { %v1523_v37 = vsel %vm1471_vm3, %v4419_v36, 0.0 }
 0x334   : > { %1614 = vrot.lane.b32.xlu0 %v5338_v31, %s4973_s21  ;;  %v5435_v31 = vpop.eup %4420 }
 0x335   : > { %v1520_v43 = vsel %vm1471_vm3, %v5435_v31, 0.0 }
 0x347   : > { %1491 = vmax.xlane.f32.xlu1 %v1490_v35 }
 0x353   : > { %1524 = vadd.xlane.f32.xlu0 %v1523_v37 }
 0x358   : > { %1706 = vrot.lane.b32.xlu1 %v5372_v41, %s4973_s21 }
 0x37c   : > { %1521 = vadd.xlane.f32.xlu1 %v1520_v43 }
 0x38d   : > { %1798 = vrot.lane.b32.xlu1 %v5367_v39, %s4973_s21 }
 0x397   : > { %v1483_v45 = vpop.xlane.xlu0 %1482 }
 0x398   : > { %v1499_v46 = vsub.f32 %v1281_v5, %v1483_v45 }
 0x39a   : > { %v1510_v47 = vmul.f32 1.442695, %v1499_v46 }
 0x39b   : > { %v1480_v50 = vpop.xlane.xlu0 %1479  ;;  %v1486_v51 = vpop.xlane.xlu1 %1485 }
 0x39c   : > { %4422 = vpow2.f32 %v1510_v47  ;;  %v1498_v41 = vsub.f32 %v1235_v2, %v1480_v50  ;;  %v1500_v52 = vsub.f32 %v1327_v10, %v1486_v51 }
 0x39e   : > { %v1508_v53 = vmul.f32 1.442695, %v1498_v41  ;;  %v1512_v54 = vmul.f32 1.442695, %v1500_v52 }
 0x39f   : > { %v1489_v55 = vpop.xlane.xlu0 %1488  ;;  %v1661_v3 = vpop.permute.xlu1 %1660 }
 0x3a0   : > { %4424 = vpow2.f32 %v1508_v53  ;;  %v1501_v63 = vsub.f32 %v5419_v16, %v1489_v55 }
 0x3a1   : > { %4426 = vpow2.f32 %v1512_v54 }
 0x3a2   : > { %v1514_v1 = vmul.f32 1.442695, %v1501_v63 }
 0x3a4   : > { %4428 = vpow2.f32 %v1514_v1 }
 0x3a7   : > { %v1495_v56 = vpop.xlane.xlu0 %1494 }
 0x3a8   : > { %v1503_v2 = vsub.f32 %v1465_v25, %v1495_v56 }
 0x3a9   : > { %v4423_v57 = vpop.eup %4422 }
 0x3aa   : > { %v1529_v58 = vsel %vm1471_vm3, %v4423_v57, 0.0  ;;  %v1518_v4 = vmul.f32 1.442695, %v1503_v2 }
 0x3ab   : > { %1530 = vadd.xlane.f32.xlu0 %v1529_v58  ;;  %v1615_v59 = vpop.permute.xlu0 %1614 }
 0x3ac   : > { %4002 = vmatpush3.bf16.msra.mxu1 %v1615_v59  ;;  %4430 = vpow2.f32 %v1518_v4 }
 0x3ad   : > { %v5442_v39 = vpop.eup %4424  ;;  %4013 = vmatprep.subr.bf16.mxu1 %v4968_v0 }
 0x3ae   : > { %v1526_v60 = vsel %vm1471_vm3, %v5442_v39, 0.0  ;;  %v5447_v61 = vpop.eup %4426 }
 0x3af   : > { %v1532_v62 = vsel %vm1471_vm3, %v5447_v61, 0.0 }
 0x3b1   : > { %1527 = vadd.xlane.f32.xlu1 %v1526_v60  ;;  %v5455_v8 = vpop.eup %4428 }
 0x3b5   : > { %1533 = vadd.xlane.f32.xlu1 %v1532_v62 }
 0x3b9   : > { %v5459_v10 = vpop.eup %4430 }
 0x3ba   : > { %v1541_v12 = vsel %vm1471_vm3, %v5459_v10, 0.0 }
 0x3c1   : > { %1752 = vrot.lane.b32.xlu0 %v5377_v44, %s4973_s21  ;;  %v1535_v44 = vsel %vm1471_vm3, %v5455_v8, 0.0 }
 0x3d0   : > { %v1492_v5 = vpop.xlane.xlu1 %1491 }
 0x3d1   : > { %v1502_v6 = vsub.f32 %v5423_v21, %v1492_v5 }
 0x3d3   : > { %v1516_v7 = vmul.f32 1.442695, %v1502_v6 }
 0x3d4   : > { %v1707_v17 = vpop.permute.xlu1 %1706 }
 0x3d5   : > { %4432 = vpow2.f32 %v1516_v7 }
 0x3dc   : > { %v1525_v9 = vpop.xlane.xlu0 %1524 }
 0x3dd   : > { %4434 = vrcp.f32 %v1525_v9 }
 0x3e0   : > { %1536 = vadd.xlane.f32.xlu0 %v1535_v44 }
 0x3e2   : > { %v5461_v11 = vpop.eup %4432 }
 0x3e3   : > { %v1538_v13 = vsel %vm1471_vm3, %v5461_v11, 0.0 }
 0x3e4   : > { %1542 = vadd.xlane.f32.xlu0 %v1541_v12  ;;  %1539 = vadd.xlane.f32.xlu1 %v1538_v13 }
 0x3ea   : > { %v4435_v14 = vpop.eup %4434 }
 0x3eb   : > { %v1547_v15 = vmul.f32 %v4435_v14, %v4419_v36  ;;  %v4400_v14 = vld [vmem:[%s5845_s9 + $0x8] sm:$0xff]  }
 0x3ed   : > { %v1561_v16 = vpack.c.bf16 %v1547_v15, %v1547_v15 }
 0x3ef   : > { %4004 = vmatmul.mubr.msk.bf16.vlgmr.msra.gmra.mxu1 %vm1471_vm3, %v1561_v16 }
 0x3f0   : > { %4014 = vmatpush3.bf16.msra.mxu1 %v1707_v17  ;;  %4015 = vmatprep.mubr.msk.bf16.mxu1 %vm4969_vm0, %v4968_v0 }
 0x3f1   : > { %4025 = vmatprep.subr.bf16.mxu1 %v4968_v0 }
 0x3f5   : > { %1890 = vrot.lane.b32.xlu1 %v5387_v48, %s4973_s21 }
 0x3fa   : > { %1844 = vrot.lane.b32.xlu0 %v5393_v49, %s4973_s21 }
 0x405   : > { %v1522_v18 = vpop.xlane.xlu1 %1521 }
 0x406   : > { %4436 = vrcp.f32 %v1522_v18 }
 0x409   : > { %v1799_v48 = vpop.permute.xlu1 %1798 }
 0x413   : > { %v4437_v19 = vpop.eup %4436 }
 0x414   : > { %v1545_v20 = vmul.f32 %v4437_v19, %v5435_v31 }
 0x416   : > { %v1560_v21 = vpack.c.bf16 %v1545_v20, %v1545_v20 }
 0x418   : > { %3998 = vmatmul.mubr.msk.bf16.vlgmr.msra.gmra.mxu0 %vm1471_vm3, %v1560_v21 }
 0x419   : > { %4008 = vmatpush3.bf16.msra.mxu0 %v1661_v3  ;;  %4009 = vmatprep.mubr.msk.bf16.mxu0 %vm4969_vm0, %v4968_v0 }
 0x41a   : > { %4019 = vmatprep.subr.bf16.mxu0 %v4968_v0 }
 0x434   : > { %v1531_v22 = vpop.xlane.xlu0 %1530 }
 0x435   : > { %4438 = vrcp.f32 %v1531_v22 }
 0x438   : > { %v1753_v32 = vpop.permute.xlu0 %1752 }
 0x43a   : > { %v1528_v23 = vpop.xlane.xlu1 %1527 }
 0x43b   : > { %4440 = vrcp.f32 %v1528_v23 }
 0x43e   : > { %v1534_v49 = vpop.xlane.xlu1 %1533 }
 0x43f   : > { %4442 = vrcp.f32 %v1534_v49 }
 0x442   : > { %v4439_v24 = vpop.eup %4438 }
 0x443   : > { %v1551_v25 = vmul.f32 %v4439_v24, %v4423_v57 }
 0x445   : > { %v1563_v26 = vpack.c.bf16 %v1551_v25, %v1551_v25 }
 0x447   : > { %4016 = vmatmul.mubr.msk.bf16.vlgmr.msra.gmra.mxu1 %vm1471_vm3, %v1563_v26 }
 0x448   : > { %v4441_v27 = vpop.eup %4440  ;;  %4026 = vmatpush3.bf16.msra.mxu1 %v1799_v48  ;;  %4027 = vmatprep.mubr.msk.bf16.mxu1 %vm4969_vm0, %v4968_v0 }
 0x449   : > { %v1549_v28 = vmul.f32 %v4441_v27, %v5442_v39  ;;  %4037 = vmatprep.subr.bf16.mxu1 %v4968_v0 }
 0x44b   : > { %v1562_v29 = vpack.c.bf16 %v1549_v28, %v1549_v28 }
 0x44c   : > { %v4443_v30 = vpop.eup %4442 }
 0x44d   : > { %4010 = vmatmul.mubr.msk.bf16.vlgmr.msra.gmra.mxu0 %vm1471_vm3, %v1562_v29  ;;  %v1553_v33 = vmul.f32 %v4443_v30, %v5447_v61 }
 0x44e   : > { %4020 = vmatpush3.bf16.msra.mxu0 %v1753_v32  ;;  %4021 = vmatprep.mubr.msk.bf16.mxu0 %vm4969_vm0, %v4968_v0 }
 0x44f   : > { %4031 = vmatprep.subr.bf16.mxu0 %v4968_v0  ;;  %v1564_v34 = vpack.c.bf16 %v1553_v33, %v1553_v33 }
 0x455   : > { %4022 = vmatmul.mubr.msk.bf16.vlgmr.msra.gmra.mxu0 %vm1471_vm3, %v1564_v34 }
 0x456   : > { %4033 = vmatprep.mubr.msk.bf16.mxu0 %vm4969_vm0, %v4968_v0 }
 0x469   : > { %v1537_v35 = vpop.xlane.xlu0 %1536 }
 0x46a   : > { %4444 = vrcp.f32 %v1537_v35 }
 0x46d   : > { %v1543_v36 = vpop.xlane.xlu0 %1542  ;;  %v1540_v37 = vpop.xlane.xlu1 %1539 }
 0x46e   : > { %4446 = vrcp.f32 %v1543_v36 }
 0x46f   : > { %4448 = vrcp.f32 %v1540_v37 }
 0x471   : > { %v1845_v40 = vpop.permute.xlu0 %1844  ;;  %v1891_v46 = vpop.permute.xlu1 %1890 }
 0x472   : > { %4032 = vmatpush3.bf16.msra.mxu0 %v1845_v40 }
 0x473   : > { %4043 = vmatprep.subr.bf16.mxu0 %v4968_v0 }
 0x477   : > { %v4445_v38 = vpop.eup %4444 }
 0x478   : > { %v1555_v42 = vmul.f32 %v4445_v38, %v5455_v8 }
 0x47a   : > { %v1565_v31 = vpack.c.bf16 %v1555_v42, %v1555_v42 }
 0x47b   : > { %v4447_v43 = vpop.eup %4446 }
 0x47c   : > { %v4449_v45 = vpop.eup %4448  ;;  %4028 = vmatmul.mubr.msk.bf16.vlgmr.msra.gmra.mxu1 %vm1471_vm3, %v1565_v31  ;;  %v1559_v50 = vmul.f32 %v4447_v43, %v5459_v10  ;;  %v4398_v10 = vld [vmem:[#allocation5 + $0x8] sm:$0xff]   ;;  %v4402_v31 = vld [vmem:[%s5522_s25] sm:$0xff]  }
 0x47d   : > { %4038 = vmatpush3.bf16.msra.mxu1 %v1891_v46  ;;  %v1557_v47 = vmul.f32 %v4449_v45, %v5461_v11  ;;  %4039 = vmatprep.mubr.msk.bf16.mxu1 %vm4969_vm0, %v4968_v0  ;;  %v4399_v11 = vld [vmem:[#allocation5] sm:$0xff]   ;;  %v4401_v45 = vld [vmem:[%s5845_s9] sm:$0xff]   ;;  %v4403_v46 = vld [vmem:[%s5522_s25 + $0x8] sm:$0xff]  }
 0x47e   : > { %4051 = vmatprep.subr.bf16.mxu1 %v4968_v0  ;;  %v1567_v41 = vpack.c.bf16 %v1559_v50, %v1559_v50  ;;  %v4405_v50 = vld [vmem:[#allocation11] sm:$0xff]  }
 0x47f   : > { %v1566_v51 = vpack.c.bf16 %v1557_v47, %v1557_v47  ;;  %v4404_v47 = vld [vmem:[#allocation11 + $0x8] sm:$0xff]  }
 0x481   : > { %4034 = vmatmul.mubr.msk.bf16.vlgmr.msra.gmra.mxu0 %vm1471_vm3, %v1566_v51 }
 0x482   : > { %4047 = vmatprep.mubr.msk.bf16.mxu0 %vm4969_vm0, %v4968_v0  ;;  %4044 = vmatpush3.bf16.msra.mxu0 %v4398_v10 }
 0x483   : > { %4045 = vmatprep.subr.bf16.mxu0 %v4968_v0 }
 0x484   : > { %4040 = vmatmul.mubr.msk.bf16.vlgmr.msra.gmra.mxu1 %vm1471_vm3, %v1567_v41  ;;  %v3767_v41 = vld [vmem:[#allocation10] ss:$0 sm:$0xff] }
 0x485   : > { %4055 = vmatprep.mubr.msk.bf16.mxu1 %vm4969_vm0, %v4968_v0  ;;  %4052 = vmatpush3.bf16.msra.mxu1 %v4404_v47 }
 0x486   : > { %4046 = vmatpush3.bf16.msra.mxu0 %v4399_v11  ;;  %4053 = vmatprep.subr.bf16.mxu1 %v4968_v0 }
 0x487   : > { %4059 = vmatprep.subr.bf16.mxu0 %v4400_v14 }
 0x489   : > { %4054 = vmatpush3.bf16.msra.mxu1 %v4405_v50 }
 0x48a   : > { %4067 = vmatprep.subr.bf16.mxu1 %v4968_v0 }
 0x4af   : > { %v5507_v52 = vpop.f32.mrf.mxu1 }
 0x4b0   : > { %v1937_v30 = vpack.c.bf16 %v5507_v52, %v5507_v52 }
 0x4b1   : > { %v4005_v53 = vpop.f32.mrf.mxu1 }
 0x4b3   : > { %v1657_v54 = vpop.f32.mrf.mxu1 }
 0x4b5   : > { %v4006_v55 = vpop.f32.mrf.mxu1 }
 0x4d8   : > { %v1608_v56 = vpop.f32.mrf.mxu0 }
 0x4d9   : > { %v1936_v32 = vpack.c.bf16 %v1608_v56, %v1608_v56 }
 0x4da   : > { %v3999_v57 = vpop.f32.mrf.mxu0 }
 0x4dc   : > { %v1611_v58 = vpop.f32.mrf.mxu0 }
 0x4de   : > { %v4000_v59 = vpop.f32.mrf.mxu0 }
 0x4df   : > { %v3776_v59 = vld [vmem:[#allocation16] ss:$0 sm:$0xff] }
 0x507   : > { %v1746_v39 = vpop.f32.mrf.mxu1 }
 0x508   : > { %v1939_v60 = vpack.c.bf16 %v1746_v39, %v1746_v39 }
 0x509   : > { %v4017_v61 = vpop.f32.mrf.mxu1 }
 0x50a   : > { %1948 = vrot.lane.b32.xlu1 %v1939_v60, %s4974_s20 }
 0x50b   : > { %v1749_v62 = vpop.f32.mrf.mxu1 }
 0x50d   : > { %v1700_v63 = vpop.f32.mrf.mxu0  ;;  %v4018_v1 = vpop.f32.mrf.mxu1 }
 0x50e   : > { %v1938_v2 = vpack.c.bf16 %v1700_v63, %v1700_v63 }
 0x50f   : > { %v4011_v3 = vpop.f32.mrf.mxu0 }
 0x510   : > { %1946 = vrot.lane.b32.xlu0 %v1938_v2, %s4974_s20 }
 0x511   : > { %v1703_v4 = vpop.f32.mrf.mxu0 }
 0x513   : > { %v4012_v5 = vpop.f32.mrf.mxu0 }
 0x515   : > { %v1792_v6 = vpop.f32.mrf.mxu0 }
 0x516   : > { %v1940_v7 = vpack.c.bf16 %v1792_v6, %v1792_v6 }
 0x517   : > { %v4023_v8 = vpop.f32.mrf.mxu0 }
 0x518   : > { %1952 = vrot.lane.b32.xlu0 %v1940_v7, %s4975_s0  ;;  %v3772_v7 = vld [vmem:[#allocation14] ss:$0 sm:$0xff] }
 0x519   : > { %v1795_v9 = vpop.f32.mrf.mxu0 }
 0x51b   : > { %v4024_v44 = vpop.f32.mrf.mxu0 }
 0x53c   : > { %v1838_v12 = vpop.f32.mrf.mxu1 }
 0x53d   : > { %v1941_v13 = vpack.c.bf16 %v1838_v12, %v1838_v12 }
 0x53e   : > { %v4029_v15 = vpop.f32.mrf.mxu1 }
 0x53f   : > { %1954 = vrot.lane.b32.xlu1 %v1941_v13, %s4975_s0 }
 0x540   : > { %v1841_v16 = vpop.f32.mrf.mxu1 }
 0x541   : > { %v1884_v17 = vpop.f32.mrf.mxu0 }
 0x542   : > { %v1942_v18 = vpack.c.bf16 %v1884_v17, %v1884_v17  ;;  %v4030_v19 = vpop.f32.mrf.mxu1 }
 0x543   : > { %v4035_v20 = vpop.f32.mrf.mxu0 }
 0x544   : > { %1958 = vrot.lane.b32.xlu0 %v1942_v18, %s4976_s5  ;;  %v1930_v21 = vpop.f32.mrf.mxu1 }
 0x545   : > { %v1887_v22 = vpop.f32.mrf.mxu0  ;;  %v1943_v48 = vpack.c.bf16 %v1930_v21, %v1930_v21 }
 0x546   : > { %v4041_v23 = vpop.f32.mrf.mxu1 }
 0x547   : > { %v4036_v49 = vpop.f32.mrf.mxu0  ;;  %1960 = vrot.lane.b32.xlu1 %v1943_v48, %s4976_s5 }
 0x548   : > { %v1933_v24 = vpop.f32.mrf.mxu1 }
 0x54a   : > { %v4042_v25 = vpop.f32.mrf.mxu1 }
 0x57c   : > { %v1949_v27 = vpop.permute.xlu1 %1948 }
 0x57d   : > { %v1967_v34 = vsel %vm1102_vm2, %v1937_v30, %v1949_v27 }
 0x582   : > { %v1947_v26 = vpop.permute.xlu0 %1946 }
 0x583   : > { %v1964_v35 = vsel %vm1102_vm2, %v1936_v32, %v1947_v26 }
 0x58a   : > { %v1953_v28 = vpop.permute.xlu0 %1952 }
 0x58b   : > { %v1969_v36 = vsel %vm1471_vm3, %v1964_v35, %v1953_v28 }
 0x5b1   : > { %v1955_v29 = vpop.permute.xlu1 %1954 }
 0x5b2   : > { %v1971_v37 = vsel %vm1471_vm3, %v1967_v34, %v1955_v29 }
 0x5b6   : > { %v1959_v33 = vpop.permute.xlu0 %1958 }
 0x5b7   : > { %v1974_v38 = vsel %vm1972_vm4, %v1969_v36, %v1959_v33 }
 0x5b9   : > { %v1961_v40 = vpop.permute.xlu1 %1960 }
 0x5ba   : > { %v1976_v42 = vsel %vm1972_vm4, %v1971_v37, %v1961_v40 }
 0x5bb   : > { %v3768_v43 = vcombine.low %v1974_v38, %v1976_v42 }
 0x5bd   : > { %4048 = vmatmul.mubr.msk.bf16.vlgmr.msra.gmra.mxu0 %vm942_vm1, %v3768_v43 }
 0x5be   : > { %4060 = vmatpush3.bf16.msra.mxu0 %v4400_v14  ;;  %4063 = vmatprep.mubr.msk.bf16.mxu0 %vm942_vm1, %v4402_v31 }
 0x5bf   : > { %4061 = vmatprep.subr.bf16.mxu0 %v4401_v45 }
 0x5c2   : > { %4062 = vmatpush3.bf16.msra.mxu0 %v4401_v45 }
 0x5c3   : > { %4073 = vmatprep.subr.bf16.mxu0 %v4968_v0 }
 0x5c5   : > { %4064 = vmatmul.mubr.msk.bf16.vlgmr.msra.gmra.mxu0 %vm942_vm1, %v4403_v46 }
 0x5c6   : > { %4075 = vmatprep.mubr.msk.bf16.mxu0 %vm4969_vm0, %v4968_v0 }
 0x67d   : > { %v2037_v51 = vpop.f32.mrf.mxu0 }
 0x67e   : > { %v2038_v54 = vadd.f32 %v3767_v41, %v2037_v51 }
 0x67f   : > { %v4049_v52 = vpop.f32.mrf.mxu0 }
 0x681   : > { %v2040_v53 = vpop.f32.mrf.mxu0 }
 0x682   : > { %v2041_v55 = vadd.f32 %v3767_v41, %v2040_v53 }
 0x683   : > { %v4050_v56 = vpop.f32.mrf.mxu0 }
 0x684   : > { %v2048_v57 = vpack.c.bf16 %v2041_v55, %v2038_v54 }
 0x685   : > { %v4065_v58 = vpop.f32.mrf.mxu0 }
 0x686   : > { %4056 = vmatmul.mubr.msk.bf16.vlgmr.msra.gmra.mxu1 %vm942_vm1, %v2048_v57  ;;  %v2203_v60 = vadd.f32 %v4065_v58, %v3776_v59 }
 0x687   : > { %v2194_v39 = vpop.f32.mrf.mxu0  ;;  %4069 = vmatprep.mubr.msk.bf16.mxu1 %vm4969_vm0, %v4968_v0 }
 0x688   : > { %v2195_v62 = vadd.f32 %v3776_v59, %v2194_v39 }
 0x689   : > { %v4066_v61 = vpop.f32.mrf.mxu0 }
 0x68a   : > { %v2206_v63 = vadd.f32 %v4066_v61, %v3776_v59 }
 0x68b   : > { %v2197_v1 = vpop.f32.mrf.mxu0 }
 0x68c   : > { %v5550_v2 = vpack.c.bf16 %v2206_v63, %v2203_v60  ;;  %v2198_v3 = vadd.f32 %v3776_v59, %v2197_v1 }
 0x68e   : > { %v2217_v4 = vpack.c.bf16 %v2198_v3, %v2195_v62  ;;  %2235 = vrot.lane.b32.xlu1 %v5550_v2, %s4970_s3  ;;  %v2295_v5 = vsel %vm1102_vm2, %v5550_v2, 0 }
 0x68f   : > { %4074 = vmatpush3.bf16.xpose.msra.mxu0 %v2295_v5 }
 0x690   : > { %2233 = vrot.lane.b32.xlu0 %v2217_v4, %s4970_s3  ;;  %v2249_v6 = vsel %vm1102_vm2, %v2217_v4, 0  ;;  %4085 = vmatprep.subr.bf16.mxu0 %v4968_v0 }
 0x691   : > { %4068 = vmatpush3.bf16.xpose.msra.mxu1 %v2249_v6 }
 0x692   : > { %2239 = vrot.lane.b32.xlu1 %v5550_v2, %s4971_s27  ;;  %4079 = vmatprep.subr.bf16.mxu1 %v4968_v0 }
 0x694   : > { %2237 = vrot.lane.b32.xlu0 %v2217_v4, %s4971_s27 }
 0x700   : > { %v5569_v18 = vpop.permute.xlu1 %2235 }
 0x701   : > { %v2387_v20 = vsel %vm1102_vm2, %v5569_v18, 0 }
 0x702   : > { %v5563_v12 = vpop.permute.xlu0 %2233 }
 0x703   : > { %v2341_v15 = vsel %vm1102_vm2, %v5563_v12, 0 }
 0x704   : > { %v5591_v22 = vpop.permute.xlu1 %2239 }
 0x705   : > { %v2479_v24 = vsel %vm1102_vm2, %v5591_v22, 0 }
 0x706   : > { %v5589_v21 = vpop.permute.xlu0 %2237 }
 0x707   : > { %v2433_v23 = vsel %vm1102_vm2, %v5589_v21, 0 }
 0x746   : > { %v2119_v8 = vpop.f32.mrf.mxu1 }
 0x747   : > { %v2120_v9 = vadd.f32 %v3772_v7, %v2119_v8 }
 0x748   : > { %v4057_v44 = vpop.f32.mrf.mxu1 }
 0x749   : > { %v2209_v10 = vmul.f32 0.35355338, %v2120_v9 }
 0x74a   : > { %v2122_v11 = vpop.f32.mrf.mxu1 }
 0x74b   : > { %v3832_v13 = vpack.c.bf16 %v2209_v10, %v2209_v10  ;;  %v2123_v14 = vadd.f32 %v3772_v7, %v2122_v11 }
 0x74c   : > { %v4058_v16 = vpop.f32.mrf.mxu1 }
 0x74d   : > { %v2210_v17 = vmul.f32 0.35355338, %v2123_v14  ;;  %2219 = vrot.lane.b32.xlu0 %v3832_v13, %s4970_s3  ;;  %4070 = vmatmul.mubr.msk.bf16.vlgmr.msra.gmra.mxu1 %vm1102_vm2, %v3832_v13 }
 0x74e   : > { %4080 = vmatpush3.bf16.xpose.msra.mxu1 %v2341_v15  ;;  %4081 = vmatprep.mubr.msk.bf16.mxu1 %vm4969_vm0, %v4968_v0 }
 0x74f   : > { %v3833_v19 = vpack.c.bf16 %v2210_v17, %v2210_v17  ;;  %4091 = vmatprep.subr.bf16.mxu1 %v4968_v0 }
 0x751   : > { %2221 = vrot.lane.b32.xlu1 %v3833_v19, %s4970_s3  ;;  %4076 = vmatmul.mubr.msk.bf16.vlgmr.msra.gmra.mxu0 %vm1102_vm2, %v3833_v19 }
 0x752   : > { %2223 = vrot.lane.b32.xlu0 %v3832_v13, %s4971_s27  ;;  %4086 = vmatpush3.bf16.xpose.msra.mxu0 %v2387_v20 }
 0x753   : > { %4087 = vmatprep.mubr.msk.bf16.mxu0 %vm4969_vm0, %v4968_v0  ;;  %4097 = vmatprep.subr.bf16.mxu0 %v4968_v0 }
 0x755   : > { %2225 = vrot.lane.b32.xlu1 %v3833_v19, %s4971_s27 }
 0x756   : > { %2241 = vrot.lane.b32.xlu0 %v2217_v4, %s4972_s29 }
 0x759   : > { %2243 = vrot.lane.b32.xlu1 %v5550_v2, %s4972_s29 }
 0x75a   : > { %2227 = vrot.lane.b32.xlu0 %v3832_v13, %s4972_s29 }
 0x75d   : > { %2229 = vrot.lane.b32.xlu1 %v3833_v19, %s4972_s29 }
 0x761   : > { %2709 = vrot.lane.b32.xlu1 %v2217_v4, %s4973_s21 }
 0x7bf   : > { %v2220_v48 = vpop.permute.xlu0 %2219 }
 0x7c0   : > { %4082 = vmatmul.mubr.msk.bf16.vlgmr.msra.gmra.mxu1 %vm1102_vm2, %v2220_v48 }
 0x7c1   : > { %4092 = vmatpush3.bf16.xpose.msra.mxu1 %v2433_v23  ;;  %4093 = vmatprep.mubr.msk.bf16.mxu1 %vm4969_vm0, %v4968_v0 }
 0x7c2   : > { %4103 = vmatprep.subr.bf16.mxu1 %v4968_v0 }
 0x7c3   : > { %v2222_v49 = vpop.permute.xlu1 %2221 }
 0x7c4   : > { %v2224_v25 = vpop.permute.xlu0 %2223  ;;  %4088 = vmatmul.mubr.msk.bf16.vlgmr.msra.gmra.mxu0 %vm1102_vm2, %v2222_v49 }
 0x7c5   : > { %4098 = vmatpush3.bf16.xpose.msra.mxu0 %v2479_v24  ;;  %4099 = vmatprep.mubr.msk.bf16.mxu0 %vm4969_vm0, %v4968_v0 }
 0x7c6   : > { %4109 = vmatprep.subr.bf16.mxu0 %v4968_v0 }
 0x7c7   : > { %v2226_v26 = vpop.permute.xlu1 %2225 }
 0x7c8   : > { %v5605_v27 = vpop.permute.xlu0 %2241  ;;  %4094 = vmatmul.mubr.msk.bf16.vlgmr.msra.gmra.mxu1 %vm1102_vm2, %v2224_v25 }
 0x7c9   : > { %v2525_v28 = vsel %vm1102_vm2, %v5605_v27, 0  ;;  %4105 = vmatprep.mubr.msk.bf16.mxu1 %vm4969_vm0, %v4968_v0 }
 0x7ca   : > { %4104 = vmatpush3.bf16.xpose.msra.mxu1 %v2525_v28 }
 0x7cb   : > { %v5612_v29 = vpop.permute.xlu1 %2243  ;;  %4115 = vmatprep.subr.bf16.mxu1 %v4968_v0 }
 0x7cc   : > { %v2571_v30 = vsel %vm1102_vm2, %v5612_v29, 0  ;;  %4100 = vmatmul.mubr.msk.bf16.vlgmr.msra.gmra.mxu0 %vm1102_vm2, %v2226_v26  ;;  %v2228_v33 = vpop.permute.xlu0 %2227 }
 0x7cd   : > { %4110 = vmatpush3.bf16.xpose.msra.mxu0 %v2571_v30  ;;  %4111 = vmatprep.mubr.msk.bf16.mxu0 %vm4969_vm0, %v4968_v0 }
 0x7ce   : > { %4121 = vmatprep.subr.bf16.mxu0 %v4968_v0 }
 0x7cf   : > { %v2230_v32 = vpop.permute.xlu1 %2229 }
 0x7d1   : > { %4106 = vmatmul.mubr.msk.bf16.vlgmr.msra.gmra.mxu1 %vm1102_vm2, %v2228_v33 }
 0x7d2   : > { %4117 = vmatprep.mubr.msk.bf16.mxu1 %vm4969_vm0, %v4968_v0 }
 0x7d3   : > { %v2710_v34 = vpop.permute.xlu1 %2709 }
 0x7d4   : > { %4112 = vmatmul.mubr.msk.bf16.vlgmr.msra.gmra.mxu0 %vm1102_vm2, %v2230_v32  ;;  %4116 = vmatpush3.bf16.msra.mxu1 %v2710_v34 }
 0x7d5   : > { %4123 = vmatprep.mubr.msk.bf16.mxu0 %vm4969_vm0, %v4968_v0  ;;  %4127 = vmatprep.subr.bf16.mxu1 %v4968_v0 }
 0x80d   : > { %v2285_v35 = vpop.f32.mrf.mxu1 }
 0x80e   : > { %v2613_v36 = vsel %vm1471_vm3, %v2285_v35, -inf }
 0x80f   : > { %2614 = vmax.xlane.f32.xlu0 %v2613_v36  ;;  %v4071_v37 = vpop.f32.mrf.mxu1 }
 0x811   : > { %v2288_v40 = vpop.f32.mrf.mxu1  ;;  %v2331_v38 = vpop.f32.mrf.mxu0 }
 0x812   : > { %v2616_v42 = vsel %vm1471_vm3, %v2331_v38, -inf }
 0x813   : > { %v4077_v31 = vpop.f32.mrf.mxu0  ;;  %2617 = vmax.xlane.f32.xlu1 %v2616_v42  ;;  %v4072_v43 = vpop.f32.mrf.mxu1 }
 0x815   : > { %v2334_v45 = vpop.f32.mrf.mxu0 }
 0x817   : > { %v4078_v46 = vpop.f32.mrf.mxu0 }
 0x880   : > { %v2377_v47 = vpop.f32.mrf.mxu1 }
 0x881   : > { %v2619_v50 = vsel %vm1471_vm3, %v2377_v47, -inf }
 0x882   : > { %2620 = vmax.xlane.f32.xlu0 %v2619_v50  ;;  %v4083_v51 = vpop.f32.mrf.mxu1 }
 0x884   : > { %v2380_v41 = vpop.f32.mrf.mxu1  ;;  %v2423_v52 = vpop.f32.mrf.mxu0 }
 0x885   : > { %v2622_v53 = vsel %vm1471_vm3, %v2423_v52, -inf }
 0x886   : > { %v4089_v54 = vpop.f32.mrf.mxu0  ;;  %2623 = vmax.xlane.f32.xlu0 %v2622_v53  ;;  %v4084_v55 = vpop.f32.mrf.mxu1 }
 0x888   : > { %v2426_v56 = vpop.f32.mrf.mxu0  ;;  %v5632_v57 = vpop.f32.mrf.mxu1 }
 0x889   : > { %v2625_v58 = vsel %vm1471_vm3, %v5632_v57, -inf }
 0x88a   : > { %v4090_v59 = vpop.f32.mrf.mxu0  ;;  %2626 = vmax.xlane.f32.xlu1 %v2625_v58  ;;  %v4095_v39 = vpop.f32.mrf.mxu1 }
 0x88c   : > { %v2472_v60 = vpop.f32.mrf.mxu1  ;;  %v5636_v61 = vpop.f32.mrf.mxu0 }
 0x88d   : > { %v2628_v62 = vsel %vm1471_vm3, %v5636_v61, -inf }
 0x88e   : > { %v4101_v63 = vpop.f32.mrf.mxu0  ;;  %2629 = vmax.xlane.f32.xlu0 %v2628_v62  ;;  %v4096_v1 = vpop.f32.mrf.mxu1 }
 0x890   : > { %v2518_v3 = vpop.f32.mrf.mxu0 }
 0x891   : > { %v2561_v4 = vpop.f32.mrf.mxu1 }
 0x892   : > { %v4102_v5 = vpop.f32.mrf.mxu0  ;;  %v2631_v6 = vsel %vm1471_vm3, %v2561_v4, -inf }
 0x893   : > { %2632 = vmax.xlane.f32.xlu1 %v2631_v6  ;;  %v4107_v7 = vpop.f32.mrf.mxu1 }
 0x894   : > { %v2607_v8 = vpop.f32.mrf.mxu0 }
 0x895   : > { %v2564_v9 = vpop.f32.mrf.mxu1  ;;  %v2634_v44 = vsel %vm1471_vm3, %v2607_v8, -inf }
 0x896   : > { %v4113_v10 = vpop.f32.mrf.mxu0  ;;  %2635 = vmax.xlane.f32.xlu0 %v2634_v44 }
 0x897   : > { %v4108_v11 = vpop.f32.mrf.mxu1 }
 0x898   : > { %v2610_v13 = vpop.f32.mrf.mxu0  ;;  %v2615_v16 = vpop.xlane.xlu0 %2614 }
 0x899   : > { %v2637_v19 = vsub.f32 %v2285_v35, %v2615_v16 }
 0x89a   : > { %v4114_v14 = vpop.f32.mrf.mxu0 }
 0x89b   : > { %v2645_v48 = vmul.f32 1.442695, %v2637_v19 }
 0x89c   : > { %v2618_v15 = vpop.xlane.xlu1 %2617 }
 0x89d   : > { %v2638_v17 = vsub.f32 %v2331_v38, %v2618_v15 }
 0x89f   : > { %v2647_v20 = vmul.f32 1.442695, %v2638_v17 }
 0x8a1   : > { %4450 = vpow2.f32 %v2647_v20 }
 0x8a2   : > { %4452 = vpow2.f32 %v2645_v48 }
 0x8a4   : > { %2801 = vrot.lane.b32.xlu1 %v5563_v12, %s4973_s21 }
 0x8a8   : > { %2847 = vrot.lane.b32.xlu1 %v5569_v18, %s4973_s21 }
 0x8ac   : > { %2755 = vrot.lane.b32.xlu0 %v5550_v2, %s4973_s21 }
 0x8ae   : > { %v4451_v23 = vpop.eup %4450 }
 0x8af   : > { %v4453_v49 = vpop.eup %4452  ;;  %v2664_v24 = vsel %vm1471_vm3, %v4451_v23, 0.0 }
 0x8b0   : > { %v2661_v12 = vsel %vm1471_vm3, %v4453_v49, 0.0 }
 0x8cb   : > { %2665 = vadd.xlane.f32.xlu0 %v2664_v24 }
 0x8cc   : > { %2662 = vadd.xlane.f32.xlu1 %v2661_v12 }
 0x90b   : > { %v2621_v18 = vpop.xlane.xlu0 %2620 }
 0x90c   : > { %v2639_v25 = vsub.f32 %v2377_v47, %v2621_v18 }
 0x90e   : > { %v2649_v26 = vmul.f32 1.442695, %v2639_v25 }
 0x90f   : > { %v2624_v2 = vpop.xlane.xlu0 %2623 }
 0x910   : > { %4454 = vpow2.f32 %v2649_v26  ;;  %v2640_v28 = vsub.f32 %v2423_v52, %v2624_v2 }
 0x912   : > { %v2651_v30 = vmul.f32 1.442695, %v2640_v28 }
 0x913   : > { %v2627_v38 = vpop.xlane.xlu1 %2626 }
 0x914   : > { %4456 = vpow2.f32 %v2651_v30  ;;  %v2641_v42 = vsub.f32 %v5632_v57, %v2627_v38 }
 0x916   : > { %v2653_v45 = vmul.f32 1.442695, %v2641_v42 }
 0x917   : > { %v2630_v32 = vpop.xlane.xlu0 %2629 }
 0x918   : > { %v2642_v43 = vsub.f32 %v5636_v61, %v2630_v32  ;;  %4458 = vpow2.f32 %v2653_v45 }
 0x91a   : > { %v2655_v47 = vmul.f32 1.442695, %v2642_v43 }
 0x91c   : > { %v2633_v31 = vpop.xlane.xlu1 %2632  ;;  %4460 = vpow2.f32 %v2655_v47 }
 0x91d   : > { %v5650_v33 = vpop.eup %4454  ;;  %v2643_v46 = vsub.f32 %v2561_v4, %v2633_v31 }
 0x91e   : > { %v2667_v34 = vsel %vm1471_vm3, %v5650_v33, 0.0 }
 0x91f   : > { %v2636_v35 = vpop.xlane.xlu0 %2635  ;;  %2668 = vadd.xlane.f32.xlu1 %v2667_v34  ;;  %v2657_v50 = vmul.f32 1.442695, %v2643_v46 }
 0x920   : > { %v2644_v51 = vsub.f32 %v2607_v8, %v2636_v35 }
 0x921   : > { %v5654_v36 = vpop.eup %4456  ;;  %4462 = vpow2.f32 %v2657_v50 }
 0x922   : > { %v2670_v37 = vsel %vm1471_vm3, %v5654_v36, 0.0  ;;  %v2659_v41 = vmul.f32 1.442695, %v2644_v51 }
 0x923   : > { %2671 = vadd.xlane.f32.xlu0 %v2670_v37  ;;  %v2756_v40 = vpop.permute.xlu0 %2755 }
 0x924   : > { %4122 = vmatpush3.bf16.msra.mxu0 %v2756_v40  ;;  %4464 = vpow2.f32 %v2659_v41 }
 0x925   : > { %4133 = vmatprep.subr.bf16.mxu0 %v4968_v0  ;;  %v4459_v52 = vpop.eup %4458 }
 0x929   : > { %v5665_v54 = vpop.eup %4460 }
 0x92a   : > { %v2676_v58 = vsel %vm1471_vm3, %v5665_v54, 0.0 }
 0x92e   : > { %v5668_v55 = vpop.eup %4462 }
 0x92f   : > { %v2679_v59 = vsel %vm1471_vm3, %v5668_v55, 0.0 }
 0x930   : > { %2939 = vrot.lane.b32.xlu1 %v5591_v22, %s4973_s21  ;;  %v2802_v22 = vpop.permute.xlu1 %2801 }
 0x931   : > { %v5674_v39 = vpop.eup %4464 }
 0x932   : > { %v2682_v60 = vsel %vm1471_vm3, %v5674_v39, 0.0 }
 0x934   : > { %v2848_v53 = vpop.permute.xlu1 %2847 }
 0x939   : > { %2893 = vrot.lane.b32.xlu0 %v5589_v21, %s4973_s21  ;;  %v2673_v21 = vsel %vm1471_vm3, %v4459_v52, 0.0 }
 0x954   : > { %v2666_v56 = vpop.xlane.xlu0 %2665  ;;  %2674 = vadd.xlane.f32.xlu1 %v2673_v21 }
 0x955   : > { %4466 = vrcp.f32 %v2666_v56  ;;  %v2663_v57 = vpop.xlane.xlu1 %2662 }
 0x956   : > { %4468 = vrcp.f32 %v2663_v57 }
 0x958   : > { %2677 = vadd.xlane.f32.xlu0 %v2676_v58  ;;  %2680 = vadd.xlane.f32.xlu1 %v2679_v59 }
 0x95c   : > { %2683 = vadd.xlane.f32.xlu0 %v2682_v60 }
 0x962   : > { %v4467_v61 = vpop.eup %4466 }
 0x963   : > { %v4469_v62 = vpop.eup %4468  ;;  %v2688_v63 = vmul.f32 %v4467_v61, %v4451_v23 }
 0x964   : > { %v2686_v1 = vmul.f32 %v4469_v62, %v4453_v49 }
 0x965   : > { %v2702_v3 = vpack.c.bf16 %v2688_v63, %v2688_v63 }
 0x966   : > { %v2701_v4 = vpack.c.bf16 %v2686_v1, %v2686_v1 }
 0x967   : > { %4124 = vmatmul.mubr.msk.bf16.vlgmr.msra.gmra.mxu0 %vm1471_vm3, %v2702_v3 }
 0x968   : > { %4118 = vmatmul.mubr.msk.bf16.vlgmr.msra.gmra.mxu1 %vm1471_vm3, %v2701_v4  ;;  %4134 = vmatpush3.bf16.msra.mxu0 %v2848_v53 }
 0x969   : > { %4128 = vmatpush3.bf16.msra.mxu1 %v2802_v22  ;;  %3031 = vrot.lane.b32.xlu1 %v5612_v29, %s4973_s21 }
 0x96a   : > { %4129 = vmatprep.mubr.msk.bf16.mxu1 %vm4969_vm0, %v4968_v0  ;;  %4139 = vmatprep.subr.bf16.mxu1 %v4968_v0 }
 0x96b   : > { %4135 = vmatprep.mubr.msk.bf16.mxu0 %vm4969_vm0, %v4968_v0  ;;  %4145 = vmatprep.subr.bf16.mxu0 %v4968_v0 }
 0x972   : > { %2985 = vrot.lane.b32.xlu0 %v5605_v27, %s4973_s21 }
 0x9a8   : > { %v2669_v5 = vpop.xlane.xlu1 %2668 }
 0x9a9   : > { %4470 = vrcp.f32 %v2669_v5 }
 0x9ac   : > { %v2672_v6 = vpop.xlane.xlu0 %2671  ;;  %v2940_v27 = vpop.permute.xlu1 %2939 }
 0x9ad   : > { %4472 = vrcp.f32 %v2672_v6 }
 0x9b0   : > { %v2894_v44 = vpop.permute.xlu0 %2893 }
 0x9b6   : > { %v4471_v7 = vpop.eup %4470 }
 0x9b7   : > { %v2690_v29 = vmul.f32 %v4471_v7, %v5650_v33 }
 0x9b9   : > { %v2703_v8 = vpack.c.bf16 %v2690_v29, %v2690_v29 }
 0x9ba   : > { %v4473_v9 = vpop.eup %4472 }
 0x9bb   : > { %4130 = vmatmul.mubr.msk.bf16.vlgmr.msra.gmra.mxu1 %vm1471_vm3, %v2703_v8  ;;  %v2692_v10 = vmul.f32 %v4473_v9, %v5654_v36 }
 0x9bc   : > { %4140 = vmatpush3.bf16.msra.mxu1 %v2894_v44  ;;  %4141 = vmatprep.mubr.msk.bf16.mxu1 %vm4969_vm0, %v4968_v0 }
 0x9bd   : > { %v2704_v11 = vpack.c.bf16 %v2692_v10, %v2692_v10  ;;  %4151 = vmatprep.subr.bf16.mxu1 %v4968_v0 }
 0x9bf   : > { %4136 = vmatmul.mubr.msk.bf16.vlgmr.msra.gmra.mxu0 %vm1471_vm3, %v2704_v11 }
 0x9c0   : > { %4146 = vmatpush3.bf16.msra.mxu0 %v2940_v27  ;;  %4147 = vmatprep.mubr.msk.bf16.mxu0 %vm4969_vm0, %v4968_v0 }
 0x9c1   : > { %4157 = vmatprep.subr.bf16.mxu0 %v4968_v0 }
 0x9dd   : > { %v2675_v13 = vpop.xlane.xlu1 %2674 }
 0x9de   : > { %4474 = vrcp.f32 %v2675_v13 }
 0x9e1   : > { %v2678_v14 = vpop.xlane.xlu0 %2677  ;;  %v2681_v15 = vpop.xlane.xlu1 %2680 }
 0x9e2   : > { %4476 = vrcp.f32 %v2678_v14 }
 0x9e3   : > { %4478 = vrcp.f32 %v2681_v15 }
 0x9e5   : > { %v2684_v16 = vpop.xlane.xlu0 %2683  ;;  %v3032_v26 = vpop.permute.xlu1 %3031 }
 0x9e6   : > { %4480 = vrcp.f32 %v2684_v16 }
 0x9e9   : > { %v2986_v49 = vpop.permute.xlu0 %2985 }
 0x9eb   : > { %v4475_v17 = vpop.eup %4474 }
 0x9ec   : > { %v2694_v19 = vmul.f32 %v4475_v17, %v4459_v52  ;;  %v4406_v52 = vld [vmem:[#allocation13 + $0x8] sm:$0xff]  }
 0x9ee   : > { %v2705_v20 = vpack.c.bf16 %v2694_v19, %v2694_v19 }
 0x9ef   : > { %v4477_v48 = vpop.eup %4476 }
 0x9f0   : > { %v4479_v23 = vpop.eup %4478  ;;  %4142 = vmatmul.mubr.msk.bf16.vlgmr.msra.gmra.mxu1 %vm1471_vm3, %v2705_v20  ;;  %v2696_v24 = vmul.f32 %v4477_v48, %v5665_v54 }
 0x9f1   : > { %4152 = vmatpush3.bf16.msra.mxu1 %v2986_v49  ;;  %4153 = vmatprep.mubr.msk.bf16.mxu1 %vm4969_vm0, %v4968_v0  ;;  %v2698_v18 = vmul.f32 %v4479_v23, %v5668_v55  ;;  %v4407_v55 = vld [vmem:[#allocation13] sm:$0xff]  }
 0x9f2   : > { %v2706_v12 = vpack.c.bf16 %v2696_v24, %v2696_v24  ;;  %4163 = vmatprep.subr.bf16.mxu1 %v4968_v0  ;;  %v3801_v24 = vld [vmem:[#allocation17] ss:$0 sm:$0xff] }
 0x9f3   : > { %v4481_v25 = vpop.eup %4480  ;;  %v2707_v2 = vpack.c.bf16 %v2698_v18, %v2698_v18 }
 0x9f4   : > { %4148 = vmatmul.mubr.msk.bf16.vlgmr.msra.gmra.mxu0 %vm1471_vm3, %v2706_v12  ;;  %v2700_v28 = vmul.f32 %v4481_v25, %v5674_v39 }
 0x9f5   : > { %4158 = vmatpush3.bf16.msra.mxu0 %v3032_v26  ;;  %4159 = vmatprep.mubr.msk.bf16.mxu0 %vm4969_vm0, %v4968_v0 }
 0x9f6   : > { %4171 = vmatprep.subr.bf16.mxu0 %v4968_v0  ;;  %v2708_v30 = vpack.c.bf16 %v2700_v28, %v2700_v28 }
 0x9f8   : > { %4154 = vmatmul.mubr.msk.bf16.vlgmr.msra.gmra.mxu1 %vm1471_vm3, %v2707_v2 }
 0x9f9   : > { %4167 = vmatprep.mubr.msk.bf16.mxu1 %vm4969_vm0, %v4968_v0  ;;  %4164 = vmatpush3.bf16.msra.mxu1 %v4406_v52 }
 0x9fa   : > { %4165 = vmatprep.subr.bf16.mxu1 %v4968_v0 }
 0x9fc   : > { %4160 = vmatmul.mubr.msk.bf16.vlgmr.msra.gmra.mxu0 %vm1471_vm3, %v2708_v30 }
 0x9fd   : > { %4175 = vmatprep.mubr.msk.bf16.mxu0 %vm4969_vm0, %v4968_v0  ;;  %4166 = vmatpush3.bf16.msra.mxu1 %v4407_v55 }
 0x9fe   : > { %4179 = vmatprep.subr.bf16.mxu1 %v4968_v0 }
 0xa27   : > { %v2795_v32 = vpop.f32.mrf.mxu0 }
 0xa28   : > { %v2749_v33 = vpop.f32.mrf.mxu1  ;;  %v3078_v13 = vpack.c.bf16 %v2795_v32, %v2795_v32 }
 0xa29   : > { %v4125_v34 = vpop.f32.mrf.mxu0  ;;  %v3077_v27 = vpack.c.bf16 %v2749_v33, %v2749_v33 }
 0xa2a   : > { %v4119_v35 = vpop.f32.mrf.mxu1 }
 0xa2b   : > { %v2798_v36 = vpop.f32.mrf.mxu0 }
 0xa2c   : > { %v2752_v37 = vpop.f32.mrf.mxu1 }
 0xa2d   : > { %v4126_v40 = vpop.f32.mrf.mxu0 }
 0xa2e   : > { %v4120_v38 = vpop.f32.mrf.mxu1 }
 0xa7b   : > { %v2841_v42 = vpop.f32.mrf.mxu1 }
 0xa7c   : > { %v3079_v31 = vpack.c.bf16 %v2841_v42, %v2841_v42 }
 0xa7d   : > { %v4131_v43 = vpop.f32.mrf.mxu1 }
 0xa7e   : > { %3087 = vrot.lane.b32.xlu0 %v3079_v31, %s4974_s20 }
 0xa7f   : > { %v2844_v45 = vpop.f32.mrf.mxu1  ;;  %v2887_v46 = vpop.f32.mrf.mxu0 }
 0xa80   : > { %v3080_v47 = vpack.c.bf16 %v2887_v46, %v2887_v46  ;;  %v4408_v45 = vld [vmem:[#allocation22 + $0x8] sm:$0xff]   ;;  %v4409_v46 = vld [vmem:[#allocation22] sm:$0xff]  }
 0xa81   : > { %v4132_v50 = vpop.f32.mrf.mxu1  ;;  %v4137_v51 = vpop.f32.mrf.mxu0  ;;  %4172 = vmatpush3.bf16.msra.mxu0 %v4408_v45 }
 0xa82   : > { %3089 = vrot.lane.b32.xlu1 %v3080_v47, %s4974_s20  ;;  %4173 = vmatprep.subr.bf16.mxu0 %v4968_v0 }
 0xa83   : > { %v2890_v41 = vpop.f32.mrf.mxu0 }
 0xa85   : > { %v4138_v22 = vpop.f32.mrf.mxu0  ;;  %4174 = vmatpush3.bf16.msra.mxu0 %v4409_v46 }
 0xab0   : > { %v2933_v53 = vpop.f32.mrf.mxu1 }
 0xab1   : > { %v3081_v54 = vpack.c.bf16 %v2933_v53, %v2933_v53 }
 0xab2   : > { %v4143_v21 = vpop.f32.mrf.mxu1 }
 0xab3   : > { %3093 = vrot.lane.b32.xlu0 %v3081_v54, %s4975_s0  ;;  %v3806_v21 = vld [vmem:[#allocation19] ss:$0 sm:$0xff] }
 0xab4   : > { %v2936_v56 = vpop.f32.mrf.mxu1  ;;  %v2979_v57 = vpop.f32.mrf.mxu0 }
 0xab5   : > { %v3082_v58 = vpack.c.bf16 %v2979_v57, %v2979_v57 }
 0xab6   : > { %v4144_v59 = vpop.f32.mrf.mxu1  ;;  %v4149_v39 = vpop.f32.mrf.mxu0 }
 0xab7   : > { %3095 = vrot.lane.b32.xlu1 %v3082_v58, %s4975_s0  ;;  %v3807_v58 = vld [vmem:[#allocation20] ss:$0 sm:$0xff]  ;;  %s881_s0 = sand.u32 1, %s4942_s28  }
 0xab8   : > { %v2982_v60 = vpop.f32.mrf.mxu0  ;;  %v3025_v61 = vpop.f32.mrf.mxu1  ;;  %s3730_s22 = sshll.u32 %s881_s0, 4 }
 0xab9   : > { %v3083_v62 = vpack.c.bf16 %v3025_v61, %v3025_v61  ;;  %s883_s3 = scalar_lea.vmem [#allocation25], %s3730_s22  ;;  %s4977_s22 = smov [#allocation25]  }
 0xaba   : > { %v4150_v63 = vpop.f32.mrf.mxu0  ;;  %v4155_v1 = vpop.f32.mrf.mxu1  ;;  %s3488_s27 = sshll.u32 %s883_s3, 4  ;;  %s4862_s30 = sshll.u32 %s4977_s22, 4  ;;  %s5792_s27 = int_to_ptr.vmem [resolvable:$true] %s3488_s27  ;;  %s4863_s30 = int_to_ptr.vmem [resolvable:$false] %s4862_s30 }
 0xabb   : > { %3099 = vrot.lane.b32.xlu0 %v3083_v62, %s4976_s5  ;;  %v4410_v62 = vld [vmem:[%s5854_s18 + $0x38] sm:$0xff]   ;;  %v4411_v63 = vld [vmem:[%s5854_s18 + $0x30] sm:$0xff]   ;;  %v4412_v1 = vld [vmem:[%s5854_s18 + $0x28] sm:$0xff]   ;;  %s4858_s4 = scalar_lea.vmem %s5792_s27, 256  ;;  %s4864_s25 = scalar_lea.vmem %s4863_s30, 512 }
 0xabc   : > { %v3028_v3 = vpop.f32.mrf.mxu1  ;;  %v3071_v4 = vpop.f32.mrf.mxu0  ;;  %p4859_p7 = scmp.ne.s32.totalorder %s5792_s27, %s4858_s4  ;;  %p4865_p0 = scmp.lt.s32.totalorder %s5792_s27, %s4863_s30 }
 0xabd   : > { %v3084_v5 = vpack.c.bf16 %v3071_v4, %v3071_v4  ;;  %v4413_v3 = vld [vmem:[%s5854_s18 + $0x20] sm:$0xff]   ;;  %v4414_v4 = vld [vmem:[%s5854_s18 + $0x18] sm:$0xff]   ;;  %p4866_p9 = scmp.lt.s32.totalorder %s4864_s25, %s4858_s4 }
 0xabe   : > { %v4156_v6 = vpop.f32.mrf.mxu1  ;;  %v4161_v7 = vpop.f32.mrf.mxu0  ;;  %p4860_p12 = pnand %p4859_p7, %p5922_p8 }
 0xabf   : > { %3101 = vrot.lane.b32.xlu1 %v3084_v5, %s4976_s5  ;;  %v4415_v5 = vld [vmem:[%s5854_s18 + $0x10] sm:$0xff]   ;;  %v4416_v6 = vld [vmem:[%s5854_s18 + $0x8] sm:$0xff]   ;;  %v4417_v7 = vld [vmem:[%s5854_s18] sm:$0xff]   ;;  %s5919_s5 = sld [smem:[#allocation50_spill]]  ;;  %p4867_p5 = por %p4866_p9, %p4865_p0 }
 0xac0   : > { %v3074_v29 = vpop.f32.mrf.mxu0  ;;  %p4861_p11 = pneg %p4860_p12 }
 0xac1   : > { %v3808_v29 = vld [vmem:[#allocation23] ss:$0 sm:$0xff] }
 0xac2   : > { %v4162_v8 = vpop.f32.mrf.mxu0  ;;  %p4868_p6 = pnand %p4867_p5, %p4861_p11 }
 0xaf0   : > { %v3088_v9 = vpop.permute.xlu0 %3087 }
 0xaf1   : > { %v3105_v15 = vsel %vm1102_vm2, %v3077_v27, %v3088_v9 }
 0xaf4   : > { %v3090_v44 = vpop.permute.xlu1 %3089 }
 0xaf5   : > { %v3108_v16 = vsel %vm1102_vm2, %v3078_v13, %v3090_v44 }
 0xb25   : > { %v3094_v10 = vpop.permute.xlu0 %3093 }
 0xb26   : > { %v3110_v17 = vsel %vm1471_vm3, %v3105_v15, %v3094_v10 }
 0xb29   : > { %v3096_v11 = vpop.permute.xlu1 %3095 }
 0xb2a   : > { %v3112_v19 = vsel %vm1471_vm3, %v3108_v16, %v3096_v11 }
 0xb2d   : > { %v3100_v14 = vpop.permute.xlu0 %3099 }
 0xb2e   : > { %v3114_v48 = vsel %vm1972_vm4, %v3110_v17, %v3100_v14 }
 0xb31   : > { %v3102_v20 = vpop.permute.xlu1 %3101 }
 0xb32   : > { %v3116_v23 = vsel %vm1972_vm4, %v3112_v19, %v3102_v20 }
 0xb33   : > { %v3802_v49 = vcombine.low %v3114_v48, %v3116_v23 }
 0xb35   : > { %4168 = vmatmul.mubr.msk.bf16.vlgmr.msra.gmra.mxu1 %vm942_vm1, %v3802_v49 }
 0xb36   : > { %4195 = vmatprep.mubr.msk.bf16.mxu1 %vm4969_vm0, %v4968_v0  ;;  %4180 = vmatpush3.bf16.msra.mxu1 %v4410_v62 }
 0xb37   : > { %4181 = vmatprep.subr.bf16.mxu1 %v4968_v0 }
 0xb3a   : > { %4182 = vmatpush3.bf16.msra.mxu1 %v4411_v63 }
 0xb3b   : > { %4183 = vmatprep.subr.bf16.mxu1 %v4968_v0 }
 0xb3e   : > { %4184 = vmatpush3.bf16.msra.mxu1 %v4412_v1 }
 0xb3f   : > { %4185 = vmatprep.subr.bf16.mxu1 %v4968_v0 }
 0xb42   : > { %4186 = vmatpush3.bf16.msra.mxu1 %v4413_v3 }
 0xb43   : > { %4187 = vmatprep.subr.bf16.mxu1 %v4968_v0 }
 0xb46   : > { %4188 = vmatpush3.bf16.msra.mxu1 %v4414_v4 }
 0xb47   : > { %4189 = vmatprep.subr.bf16.mxu1 %v4968_v0 }
 0xb4a   : > { %4190 = vmatpush3.bf16.msra.mxu1 %v4415_v5 }
 0xb4b   : > { %4191 = vmatprep.subr.bf16.mxu1 %v4968_v0 }
 0xb4e   : > { %4192 = vmatpush3.bf16.msra.mxu1 %v4416_v6 }
 0xb4f   : > { %4193 = vmatprep.subr.bf16.mxu1 %v4968_v0 }
 0xb52   : > { %4194 = vmatpush3.bf16.msra.mxu1 %v4417_v7 }
 0xbf5   : > { %v3177_v12 = vpop.f32.mrf.mxu1 }
 0xbf6   : > { %v3178_v18 = vadd.f32 %v3801_v24, %v3177_v12 }
 0xbf7   : > { %v4169_v25 = vpop.f32.mrf.mxu1 }
 0xbf8   : > { %v3186_v26 = vsel %vm942_vm1, %v3178_v18, 0.0 }
 0xbf9   : > { %3187 = vadd.xlane.f32.xlu0 %v3186_v26  ;;  %v3180_v2 = vpop.f32.mrf.mxu1 }
 0xbfa   : > { %v3181_v28 = vadd.f32 %v3801_v24, %v3180_v2 }
 0xbfb   : > { %v4170_v30 = vpop.f32.mrf.mxu1 }
 0xbfc   : > { %v3189_v32 = vsel %vm942_vm1, %v3181_v28, 0.0 }
 0xbfd   : > { %3190 = vadd.xlane.f32.xlu1 %v3189_v32  ;;  %v3812_v32 = vld [vmem:[%s5855_s19] ss:$0 sm:$0xff] }
 0xc82   : > { %v3188_v33 = vpop.xlane.xlu0 %3187 }
 0xc83   : > { %v3193_v34 = vmul.f32 0.03125, %v3188_v33 }
 0xc85   : > { %v3195_v35 = vsub.f32 %v3178_v18, %v3193_v34 }
 0xc86   : > { %v3191_v36 = vpop.xlane.xlu1 %3190 }
 0xc87   : > { %v3194_v37 = vmul.f32 0.03125, %v3191_v36  ;;  %v3197_v40 = vmul.f32 %v3195_v35, %v3195_v35 }
 0xc89   : > { %v3196_v38 = vsub.f32 %v3181_v28, %v3194_v37  ;;  %v3199_v42 = vsel %vm942_vm1, %v3197_v40, 0.0 }
 0xc8a   : > { %3200 = vadd.xlane.f32.xlu0 %v3199_v42 }
 0xc8b   : > { %v3198_v31 = vmul.f32 %v3196_v38, %v3196_v38 }
 0xc8d   : > { %v3202_v43 = vsel %vm942_vm1, %v3198_v31, 0.0 }
 0xc8e   : > { %3203 = vadd.xlane.f32.xlu0 %v3202_v43 }
 0xd13   : > { %v3201_v47 = vpop.xlane.xlu0 %3200 }
 0xd14   : > { %v3205_v50 = vmul.f32 0.03125, %v3201_v47 }
 0xd16   : > { %v3207_v51 = vadd.f32 1e-05, %v3205_v50 }
 0xd17   : > { %v3204_v41 = vpop.xlane.xlu0 %3203 }
 0xd18   : > { %4482 = vrsqrt.f32 %v3207_v51  ;;  %v3206_v22 = vmul.f32 0.03125, %v3204_v41 }
 0xd1a   : > { %v3208_v52 = vadd.f32 1e-05, %v3206_v22 }
 0xd1c   : > { %4484 = vrsqrt.f32 %v3208_v52 }
 0xd25   : > { %v4483_v53 = vpop.eup %4482 }
 0xd26   : > { %v3211_v54 = vmul.f32 %v4483_v53, %v3195_v35 }
 0xd28   : > { %v3219_v57 = vmul.f32 %v3806_v21, %v3211_v54 }
 0xd29   : > { %v4485_v55 = vpop.eup %4484 }
 0xd2a   : > { %v3212_v56 = vmul.f32 %v4485_v55, %v3196_v38  ;;  %v3227_v39 = vadd.f32 %v3807_v58, %v3219_v57 }
 0xd2c   : > { %v3220_v59 = vmul.f32 %v3806_v21, %v3212_v56 }
 0xd2e   : > { %v3228_v60 = vadd.f32 %v3807_v58, %v3220_v59  ;;  %v3821_v59 = vld [vmem:[%s5918_s1] ss:$0 sm:$0xff]  ;;  %s5795_s1 = scalar_lea.sflag [#allocation4], %s881_s0 }
 0xd30   : > { %v3229_v61 = vpack.c.bf16 %v3228_v60, %v3227_v39  ;;  %v3822_v60 = vld [vmem:[%s5919_s5] ss:$0 sm:$0xff] }
 0xd32   : > { %4176 = vmatmul.mubr.msk.bf16.vlgmr.msra.gmra.mxu0 %vm942_vm1, %v3229_v61 }
 0xdf2   : > { %v3290_v8 = vpop.f32.mrf.mxu0 }
 0xdf3   : > { %v3291_v9 = vadd.f32 %v3808_v29, %v3290_v8 }
 0xdf4   : > { %v4177_v44 = vpop.f32.mrf.mxu0 }
 0xdf5   : > { %v3299_v10 = vmul.f32 0.044715, %v3291_v9  ;;  %v3297_v18 = vmul.f32 0.5, %v3291_v9 }
 0xdf6   : > { %v3293_v11 = vpop.f32.mrf.mxu0 }
 0xdf7   : > { %v3301_v27 = vmul.f32 %v3299_v10, %v3291_v9  ;;  %v3294_v13 = vadd.f32 %v3808_v29, %v3293_v11 }
 0xdf8   : > { %v4178_v14 = vpop.f32.mrf.mxu0 }
 0xdf9   : > { %v3303_v15 = vmul.f32 %v3301_v27, %v3291_v9  ;;  %v3300_v16 = vmul.f32 0.044715, %v3294_v13  ;;  %v3298_v25 = vmul.f32 0.5, %v3294_v13 }
 0xdfb   : > { %v3305_v17 = vadd.f32 %v3303_v15, %v3291_v9  ;;  %v3302_v19 = vmul.f32 %v3300_v16, %v3294_v13 }
 0xdfd   : > { %v3307_v20 = vmul.f32 0.7978846, %v3305_v17  ;;  %v3304_v48 = vmul.f32 %v3302_v19, %v3294_v13 }
 0xdff   : > { %4486 = vtanh.f32 %v3307_v20  ;;  %v3306_v23 = vadd.f32 %v3304_v48, %v3294_v13 }
 0xe01   : > { %v3308_v49 = vmul.f32 0.7978846, %v3306_v23 }
 0xe03   : > { %4488 = vtanh.f32 %v3308_v49 }
 0xe0c   : > { %v4487_v0 = vpop.eup %4486 }
 0xe0d   : > { %v3311_v24 = vadd.f32 1.0, %v4487_v0 }
 0xe0f   : > { %v3313_v2 = vmul.f32 %v3311_v24, %v3297_v18 }
 0xe10   : > { %v4489_v12 = vpop.eup %4488 }
 0xe11   : > { %v3312_v26 = vadd.f32 1.0, %v4489_v12 }
 0xe13   : > { %v3314_v28 = vmul.f32 %v3312_v26, %v3298_v25 }
 0xe15   : > { %v3315_v30 = vpack.c.bf16 %v3314_v28, %v3313_v2 }
 0xe17   : > { %4196 = vmatmul.mubr.bf16.vlgmr.msra.gmra.mxu1 %v3315_v30 }
 0xed7   : > { %v3421_v33 = vpop.f32.mrf.mxu1 }
 0xed8   : > { %v3422_v34 = vadd.f32 %v3812_v32, %v3421_v33 }
 0xed9   : > { %v4197_v35 = vpop.f32.mrf.mxu1 }
 0xeda   : > { %v3430_v36 = vsel %vm942_vm1, %v3422_v34, 0.0 }
 0xedb   : > { %3431 = vadd.xlane.f32.xlu1 %v3430_v36  ;;  %v3424_v37 = vpop.f32.mrf.mxu1 }
 0xedc   : > { %v3425_v40 = vadd.f32 %v3812_v32, %v3424_v37 }
 0xedd   : > { %v4198_v38 = vpop.f32.mrf.mxu1 }
 0xede   : > { %v3433_v42 = vsel %vm942_vm1, %v3425_v40, 0.0 }
 0xedf   : > { %3434 = vadd.xlane.f32.xlu0 %v3433_v42 }
 0xf64   : > { %v3432_v31 = vpop.xlane.xlu1 %3431 }
 0xf65   : > { %v3436_v43 = vmul.f32 0.03125, %v3432_v31 }
 0xf67   : > { %v3438_v45 = vsub.f32 %v3422_v34, %v3436_v43 }
 0xf68   : > { %v3435_v46 = vpop.xlane.xlu0 %3434 }
 0xf69   : > { %v3437_v47 = vmul.f32 0.03125, %v3435_v46  ;;  %v3440_v50 = vmul.f32 %v3438_v45, %v3438_v45 }
 0xf6b   : > { %v3439_v51 = vsub.f32 %v3425_v40, %v3437_v47  ;;  %v3442_v41 = vsel %vm942_vm1, %v3440_v50, 0.0 }
 0xf6c   : > { %3443 = vadd.xlane.f32.xlu1 %v3442_v41 }
 0xf6d   : > { %v3441_v22 = vmul.f32 %v3439_v51, %v3439_v51 }
 0xf6f   : > { %v3445_v52 = vsel %vm942_vm1, %v3441_v22, 0.0 }
 0xf70   : > { %3446 = vadd.xlane.f32.xlu0 %v3445_v52 }
 0xff5   : > { %v3444_v53 = vpop.xlane.xlu1 %3443 }
 0xff6   : > { %v3448_v54 = vmul.f32 0.03125, %v3444_v53 }
 0xff8   : > { %v3450_v21 = vadd.f32 1e-05, %v3448_v54 }
 0xff9   : > { %v3447_v55 = vpop.xlane.xlu0 %3446 }
 0xffa   : > { %4490 = vrsqrt.f32 %v3450_v21  ;;  %v3449_v56 = vmul.f32 0.03125, %v3447_v55 }
 0xffc   : > { %v3451_v57 = vadd.f32 1e-05, %v3449_v56 }
 0xffe   : > { %4492 = vrsqrt.f32 %v3451_v57 }
0x1007   : > { %v4491_v58 = vpop.eup %4490 }
0x1008   : > { %v3454_v39 = vmul.f32 %v4491_v58, %v3438_v45 }
0x100a   : > { %v3462_v61 = vmul.f32 %v3821_v59, %v3454_v39 }
0x100b   : > { %v4493_v62 = vpop.eup %4492 }
0x100c   : > { %v3470_v63 = vadd.f32 %v3822_v60, %v3462_v61  ;;  %v3455_v1 = vmul.f32 %v4493_v62, %v3439_v51 }
0x100e   : > { %v3463_v3 = vmul.f32 %v3821_v59, %v3455_v1  ;;  %3472 = vst.msk [vmem:[%s883_s3] sm:$0xff] %vm942_vm1, %v3470_v63 }
0x1010   : > { %v3471_v4 = vadd.f32 %v3822_v60, %v3463_v3 }
0x1012   : > { %3473 = vst.msk [vmem:[%s883_s3 + $0x8] sm:$0xff] %vm942_vm1, %v3471_v4 }
0x1013   : > { %4871 = shalt.err (!%p4868_p6)
}
0x1014   : > { %s4872_s0 = scalar_lea.hbm %s5790_s24, 256  ;;  %s4876_s3 = scalar_lea.hbm %s5921_s2, 512 }
0x1015   : > { %p4873_p10 = scmp.ne.s32.totalorder %s5790_s24, %s4872_s0  ;;  %p4877_p3 = scmp.lt.s32.totalorder %s5790_s24, %s5921_s2 }
0x1016   : > { %p4878_p13 = scmp.lt.s32.totalorder %s4876_s3, %s4872_s0 }
0x1017   : > { %p4874_p1 = pnand %p4873_p10, %p5922_p8 }
0x1018   : > { %p4879_p4 = por %p4878_p13, %p4877_p3 }
0x1019   : > { %p4875_p2 = pneg %p4874_p1 }
0x101b   : > { %p4880_p7 = pnand %p4879_p4, %p4875_p2 }
0x101d   : > { %4883 = shalt.err (!%p4880_p7)
}
0x101e   : > { %s4978_s4 = smov 128  }
0x101f   : > { %4255 = dma.vmem_to_hbm [thread:$0]  (%p5922_p8), %s5792_s27, 256, %s5790_s24, %s5795_s1, %s4978_s4, %s4978_s4, %s4974_s20  }
0x1020 PF: > { %s5923_s22 = sld [smem:[#allocation37_spill]] }
0x1021   : > { %s5924_s30 = sld [smem:[#allocation35_spill]] }
0x1022   : > { %s5925_s25 = sld [smem:[#allocation41_spill]] }
0x1026   : > { %p4332_p12 = scmp.ge.s32.totalorder %s5923_s22, 2 }
0x1027   : > { %s3503_s5 = sand.u32 1, %s5924_s30  }
0x1028   : > { %p5926_p11 = scmp.ne.s32.totalorder %s5925_s25, 0  ;;  %s3504_s0 = scalar_lea.sflag [#allocation4], %s3503_s5 }
0x102a   : > { %p4301_p0 = pnand %p4332_p12, %p5926_p11 }
0x102c   : > { %p4302_p9 = pneg %p4301_p0 }
0x102e   : > { %4933 = dma.done.wait (%p4302_p9), %s3504_s0, 256  }
0x102f   : > { %4935 = vsyncadd (%p4302_p9), %s3504_s0, 4294967040  ;;  %s5927_s30 = sld [smem:[#allocation38_spill]]  ;;  %s5930_s3 = smov %s4942_s28 }
0x1030   : > { %s5928_s23 = sld [smem:[#allocation36_spill]] }
0x1031   : > { %s5929_s29 = sld [smem:[#allocation39_spill]] }
0x1035   : > { %p40_p5 = scmp.ge.s32.totalorder %s5927_s30, 4  }
0x1036   : > { %s5931_s28 = smov %s5928_s23 }
0x1037   :  { %42 = sbr.rel (!%p40_p5) target bundleno = 22 (0x16), region = 203 }
0x103c   :  { %3509 = vsyncpa [#allocation3], 1 }
0x103d   :  { %3511 = vsyncpa [#allocation3 + $0x1], 1 }
0x103e   :  { %3512 = vsyncpa [#allocation6], 1 }
0x103f   :  { %3513 = vsyncpa [#allocation9], 1 }
0x1040   :  { %3514 = vsyncpa [#allocation12], 1 }
0x1041   :  { %3515 = vsyncpa [#allocation15], 1 }
0x1042   :  { %3516 = vsyncpa [#allocation18], 1 }
0x1043   :  { %3517 = vsyncpa [#allocation21], 1 }
0x1044   :  { %3518 = vsyncpa [#allocation24], 1 }
0x1045   :  { %3519 = vsyncpa [#allocation4], 1 }
0x1046   :  { %3521 = vsyncpa [#allocation4 + $0x1], 1 }

</bundles_post_ra>
